<compile_context>
chip_gen: v7x
topology: tpu7x:2x2x1
jax: 0.10.0
libtpu: 0.0.40
codegen_flags: <defaults>
</compile_context>

<pallas_src>
import functools
import math

import jax
import jax.numpy as jnp
from jax.experimental import pallas as pl
from jax.experimental.pallas import tpu as pltpu


# ----------------------------- kernel bodies ---------------------------------

def _relu(x):
    return jnp.maximum(x, 0.0)


def _linear(x_bf16, w_ref, b_ref):
    # bf16 MXU inputs, f32 accumulation, f32 bias add.
    return jnp.dot(x_bf16, w_ref[...], preferred_element_type=jnp.float32) + b_ref[...]


def _residual(x_f32, rw1_ref, rb1_ref, rw2_ref, rb2_ref):
    h = _relu(_linear(x_f32.astype(jnp.bfloat16), rw1_ref, rb1_ref))
    x2 = _relu(_linear(h.astype(jnp.bfloat16), rw2_ref, rb2_ref))
    return _relu(x_f32 + x2)


def _n_branch_kernel(vn_ref, w1n_ref, b1n_ref, rw1_ref, rb1_ref, rw2_ref, rb2_ref,
                     w2n_ref, b2n_ref, vnp_ref, on_ref):
    # v_n = res_n(relu(lin1_n(v_n)))
    x = _relu(_linear(vn_ref[...], w1n_ref, b1n_ref))
    vn = _residual(x, rw1_ref, rb1_ref, rw2_ref, rb2_ref)
    vn_bf16 = vn.astype(jnp.bfloat16)
    vnp_ref[...] = vn_bf16                       # reused by the C branch (call 2)
    # v1_n = relu(lin2_n(v_n))
    on_ref[...] = _relu(_linear(vn_bf16, w2n_ref, b2n_ref)).astype(on_ref.dtype)


def _c_branch_kernel(vc_ref, g_ref, vnp_ref, w1c_ref, b1c_ref, rw1_ref, rb1_ref,
                     rw2_ref, rb2_ref, w2ca_ref, w2cb_ref, b2c_ref,
                     oc_ref, acc_ref):
    k = pl.program_id(1)

    @pl.when(k == 0)
    def _():
        acc_ref[...] = jnp.zeros_like(acc_ref)

    # accumulate g_nc @ v_n over N tiles (f32 VMEM accumulator)
    acc_ref[...] += jnp.dot(g_ref[...], vnp_ref[...],
                            preferred_element_type=jnp.float32)

    @pl.when(k == pl.num_programs(1) - 1)
    def _():
        # v_c = res_n(relu(lin1_c(v_c)))   (res_n on purpose, matching the PyTorch code)
        x = _relu(_linear(vc_ref[...], w1c_ref, b1c_ref))
        vc = _residual(x, rw1_ref, rb1_ref, rw2_ref, rb2_ref)
        # v1_c = relu(lin2_c(cat([v_c, g_nc @ v_n], -1)))
        #      = relu(v_c @ W2c_a + (g_nc @ v_n) @ W2c_b + b2c)
        oc = _relu(
            jnp.dot(vc.astype(jnp.bfloat16), w2ca_ref[...],
                    preferred_element_type=jnp.float32)
            + jnp.dot(acc_ref[...].astype(jnp.bfloat16), w2cb_ref[...],
                      preferred_element_type=jnp.float32)
            + b2c_ref[...]
        )
        oc_ref[...] = oc.astype(oc_ref.dtype)


# ----------------------------- tiling helpers --------------------------------

def _round_up(x, m):
    return (x + m - 1) // m * m


def _plan_rows(n, desired):
    """Tile plan for a row axis that only appears as a sublane (2nd-to-last) block dim."""
    desired = _round_up(desired, 16)
    if n >= desired:
        tile = desired
    else:
        tile = _round_up(n, 16)
    return tile, _round_up(n, tile)


def _plan_reduction(n, desired):
    """Tile plan for the N axis: it is the LANE (last) dim of the g_nc block, so the
    tile must be a multiple of 128 unless a single tile covers the whole padded axis."""
    desired = _round_up(desired, 128)
    if n >= desired:
        return desired, _round_up(n, desired)
    pad = _round_up(n, 16)
    return pad, pad


def _nbytes(shape, dtype):
    return math.prod(shape) * jnp.dtype(dtype).itemsize


def _vmem_limit(tile_bytes):
    # double-buffered pipeline tiles + headroom, clamped to v7x physical VMEM (64 MiB).
    return int(min(max(2 * tile_bytes + (8 << 20), 32 << 20), 64 << 20))


# ----------------------------- weight preparation ----------------------------

def prepare_params(params):
    """One-time (outside jit) weight prep: transpose to (in, out), split lin2_c so the
    in-kernel concat becomes two matmuls, zero-pad every feature dim to a multiple of
    128 lanes, and cast MXU operands to bf16 (biases stay f32)."""
    dim, n_dim = params["lin1_n_w"].shape
    c_dim = params["lin1_c_w"].shape[1]
    dim_pad = _round_up(dim, 128)
    kn_pad = _round_up(n_dim, 128)
    kc_pad = _round_up(c_dim, 128)

    def w(x, rows, cols):                       # PyTorch (out,in) -> padded (in_pad, out_pad)
        x = jnp.asarray(x, jnp.float32).T
        x = jnp.pad(x, ((0, rows - x.shape[0]), (0, cols - x.shape[1])))
        return x.astype(jnp.bfloat16)

    def b(x, cols):
        x = jnp.asarray(x, jnp.float32).reshape(1, -1)
        return jnp.pad(x, ((0, 0), (0, cols - x.shape[1])))

    w2c = jnp.asarray(params["lin2_c_w"], jnp.float32)          # (dim, 2*dim)
    prep = {
        "w1n": w(params["lin1_n_w"], kn_pad, dim_pad), "b1n": b(params["lin1_n_b"], dim_pad),
        "w2n": w(params["lin2_n_w"], dim_pad, dim_pad), "b2n": b(params["lin2_n_b"], dim_pad),
        "w1c": w(params["lin1_c_w"], kc_pad, dim_pad), "b1c": b(params["lin1_c_b"], dim_pad),
        "w2ca": w(w2c[:, :dim], dim_pad, dim_pad),               # multiplies v_c
        "w2cb": w(w2c[:, dim:], dim_pad, dim_pad),               # multiplies g_nc @ v_n
        "b2c": b(params["lin2_c_b"], dim_pad),
        "rw1": w(params["res_n_lin1_w"], dim_pad, dim_pad), "rb1": b(params["res_n_lin1_b"], dim_pad),
        "rw2": w(params["res_n_lin2_w"], dim_pad, dim_pad), "rb2": b(params["res_n_lin2_b"], dim_pad),
    }
    return prep, dim


# ----------------------------- wrapper ----------------------------------------

@functools.partial(jax.jit, static_argnames=("dim", "row_tile", "red_tile"))
def feature_gen_block(v_n, v_c, g_nc, prep, *, dim, row_tile=512, red_tile=512):
    N = v_n.shape[0]
    C = v_c.shape[0]
    dim_pad = prep["b2c"].shape[1]
    kn_pad = prep["w1n"].shape[0]
    kc_pad = prep["w1c"].shape[0]

    tn, n_pad = _plan_reduction(N, red_tile)   # call-1 row tile AND call-2 reduction tile
    tc, c_pad = _plan_rows(C, row_tile)

    def pad2(x, rows, cols):
        return jnp.pad(x.astype(jnp.float32),
                       ((0, rows - x.shape[0]), (0, cols - x.shape[1]))
                       ).astype(jnp.bfloat16)

    vn_p = pad2(v_n, n_pad, kn_pad)
    vc_p = pad2(v_c, c_pad, kc_pad)
    g_p = pad2(g_nc, c_pad, n_pad)

    weights_n = (prep["w1n"], prep["b1n"], prep["rw1"], prep["rb1"],
                 prep["rw2"], prep["rb2"], prep["w2n"], prep["b2n"])
    weights_c = (prep["w1c"], prep["b1c"], prep["rw1"], prep["rb1"],
                 prep["rw2"], prep["rb2"], prep["w2ca"], prep["w2cb"], prep["b2c"])

    # ---- call 1: N branch, row-parallel over N tiles ----
    whole1 = lambda a: pl.BlockSpec(a.shape, lambda i: (0, 0))
    tile_bytes1 = (_nbytes((tn, kn_pad), jnp.bfloat16)
                   + 2 * _nbytes((tn, dim_pad), jnp.float32)
                   + sum(_nbytes(a.shape, a.dtype) for a in weights_n))
    vn_proc, out_n = pl.pallas_call(
        _n_branch_kernel,
        grid=(n_pad // tn,),
        in_specs=[pl.BlockSpec((tn, kn_pad), lambda i: (i, 0))]
        + [whole1(a) for a in weights_n],
        out_specs=(pl.BlockSpec((tn, dim_pad), lambda i: (i, 0)),
                   pl.BlockSpec((tn, dim_pad), lambda i: (i, 0))),
        out_shape=(jax.ShapeDtypeStruct((n_pad, dim_pad), jnp.bfloat16),
                   jax.ShapeDtypeStruct((n_pad, dim_pad), jnp.float32)),
        compiler_params=pltpu.CompilerParams(
            dimension_semantics=("parallel",),
            vmem_limit_bytes=_vmem_limit(tile_bytes1)),
    )(vn_p, *weights_n)

    # ---- call 2: C branch, row-parallel over C tiles, N reduction accumulated ----
    whole2 = lambda a: pl.BlockSpec(a.shape, lambda i, k: (0, 0))
    tile_bytes2 = (_nbytes((tc, kc_pad), jnp.bfloat16)
                   + _nbytes((tc, tn), jnp.bfloat16)
                   + _nbytes((tn, dim_pad), jnp.bfloat16)
                   + 2 * _nbytes((tc, dim_pad), jnp.float32)
                   + sum(_nbytes(a.shape, a.dtype) for a in weights_c))
    out_c = pl.pallas_call(
        _c_branch_kernel,
        grid=(c_pad // tc, n_pad // tn),
        in_specs=[pl.BlockSpec((tc, kc_pad), lambda i, k: (i, 0)),
                  pl.BlockSpec((tc, tn), lambda i, k: (i, k)),
                  pl.BlockSpec((tn, dim_pad), lambda i, k: (k, 0))]
        + [whole2(a) for a in weights_c],
        out_specs=pl.BlockSpec((tc, dim_pad), lambda i, k: (i, 0)),
        out_shape=jax.ShapeDtypeStruct((c_pad, dim_pad), jnp.float32),
        scratch_shapes=[pltpu.VMEM((tc, dim_pad), jnp.float32)],
        compiler_params=pltpu.CompilerParams(
            dimension_semantics=("parallel", "arbitrary"),
            vmem_limit_bytes=_vmem_limit(tile_bytes2)),
    )(vc_p, g_p, vn_proc, *weights_c)

    return out_n[:N, :dim], out_c[:C, :dim]


# ----------------------------- test harness ----------------------------------

def _init_params(key, n_dim, c_dim, dim):
    """Deterministic synthetic init (PyTorch Linear shapes: W (out, in), b (out,))."""
    shapes = {
        "lin1_n_w": (dim, n_dim), "lin1_n_b": (dim,),
        "lin2_n_w": (dim, dim),   "lin2_n_b": (dim,),
        "lin1_c_w": (dim, c_dim), "lin1_c_b": (dim,),
        "lin2_c_w": (dim, 2 * dim), "lin2_c_b": (dim,),
        "res_n_lin1_w": (dim, dim), "res_n_lin1_b": (dim,),
        "res_n_lin2_w": (dim, dim), "res_n_lin2_b": (dim,),
        # res_c exists in __init__ but is unused in forward; initialized anyway.
        "res_c_lin1_w": (dim, dim), "res_c_lin1_b": (dim,),
        "res_c_lin2_w": (dim, dim), "res_c_lin2_b": (dim,),
    }
    params = {}
    keys = jax.random.split(key, len(shapes))
    for k_rng, (name, shape) in zip(keys, sorted(shapes.items())):
        fan_in = shape[-1] if len(shape) > 1 else shape[0]
        bound = 1.0 / jnp.sqrt(jnp.float32(fan_in))
        params[name] = jax.random.uniform(
            k_rng, shape, jnp.float32, minval=-bound, maxval=bound
        )
    return params


def _reference(v_n, v_c, g_nc, p):
    """Pure-JAX reference mirroring the PyTorch forward exactly, with the same
    bf16-MXU-input / f32-accumulate precision choice as the kernel."""
    bf = jnp.bfloat16

    def lin(x, w, b):
        return (jnp.dot(x.astype(bf), jnp.asarray(w, jnp.float32).T.astype(bf),
                        preferred_element_type=jnp.float32)
                + jnp.asarray(b, jnp.float32))

    def res_n(x):
        h = jax.nn.relu(lin(x, p["res_n_lin1_w"], p["res_n_lin1_b"]))
        x2 = jax.nn.relu(lin(h, p["res_n_lin2_w"], p["res_n_lin2_b"]))
        return jax.nn.relu(x + x2)

    vn = res_n(jax.nn.relu(lin(v_n, p["lin1_n_w"], p["lin1_n_b"])))
    vc = res_n(jax.nn.relu(lin(v_c, p["lin1_c_w"], p["lin1_c_b"])))
    v1_n = jax.nn.relu(lin(vn, p["lin2_n_w"], p["lin2_n_b"]))
    gvn = jnp.dot(g_nc.astype(bf), vn.astype(bf), preferred_element_type=jnp.float32)
    v1_c = jax.nn.relu(lin(jnp.concatenate([vc, gvn], axis=-1),
                           p["lin2_c_w"], p["lin2_c_b"]))
    return v1_n, v1_c


if __name__ == "__main__":
    key = jax.random.PRNGKey(0)
    k_p, k_n, k_c, k_g = jax.random.split(key, 4)

    # Small but multi-tile at the chosen tile sizes: exercises the pipelined grid,
    # the "parallel" row axes and the accumulated N reduction (grid (2,) and (2,2)).
    N, C = 256, 160
    n_dim, c_dim, dim = 16, 24, 32

    params = _init_params(k_p, n_dim, c_dim, dim)
    v_n = jax.random.normal(k_n, (N, n_dim), jnp.float32)
    v_c = jax.random.normal(k_c, (C, c_dim), jnp.float32)
    g_nc = jax.random.normal(k_g, (C, N), jnp.float32)

    prep, dim_out = prepare_params(params)     # one-time weight prep (outside jit)

    out_n, out_c = feature_gen_block(v_n, v_c, g_nc, prep, dim=dim_out,
                                     row_tile=128, red_tile=128)
    jax.block_until_ready((out_n, out_c))

    ref_n, ref_c = _reference(v_n, v_c, g_nc, params)
    assert out_n.shape == (N, dim) and out_c.shape == (C, dim)
    assert jnp.allclose(out_n, ref_n, atol=1e-2, rtol=1e-2), "v1_n mismatch"
    assert jnp.allclose(out_c, ref_c, atol=1e-2, rtol=1e-2), "v1_c mismatch"

    print("KERNEL_OK")
</pallas_src>

<mosaic_0001>
module attributes {stable_mosaic.version = 11 : i64} {
  func.func @_n_branch_kernel(%arg0: i32, %arg1: memref<128x128xbf16, #tpu.memory_space<vmem>>, %arg2: memref<128x128xbf16, #tpu.memory_space<vmem>>, %arg3: memref<1x128xf32, #tpu.memory_space<vmem>>, %arg4: memref<128x128xbf16, #tpu.memory_space<vmem>>, %arg5: memref<1x128xf32, #tpu.memory_space<vmem>>, %arg6: memref<128x128xbf16, #tpu.memory_space<vmem>>, %arg7: memref<1x128xf32, #tpu.memory_space<vmem>>, %arg8: memref<128x128xbf16, #tpu.memory_space<vmem>>, %arg9: memref<1x128xf32, #tpu.memory_space<vmem>>, %arg10: memref<128x128xbf16, #tpu.memory_space<vmem>>, %arg11: memref<128x128xf32, #tpu.memory_space<vmem>>) attributes {dimension_semantics = [#tpu.dimension_semantics<parallel>], iteration_bounds = array<i64: 2>, scalar_prefetch = 0 : i64, scratch_operands = 0 : i64, tpu.core_type = #tpu.core_type<tc>, window_params = [{transform_indices = @transform_0, window_bounds = array<i64: 128, 128>}, {pipeline_mode = #tpu.pipeline_mode<synchronous>, transform_indices = @transform_1, window_bounds = array<i64: 128, 128>}, {pipeline_mode = #tpu.pipeline_mode<synchronous>, transform_indices = @transform_2, window_bounds = array<i64: 1, 128>}, {pipeline_mode = #tpu.pipeline_mode<synchronous>, transform_indices = @transform_3, window_bounds = array<i64: 128, 128>}, {pipeline_mode = #tpu.pipeline_mode<synchronous>, transform_indices = @transform_4, window_bounds = array<i64: 1, 128>}, {pipeline_mode = #tpu.pipeline_mode<synchronous>, transform_indices = @transform_5, window_bounds = array<i64: 128, 128>}, {pipeline_mode = #tpu.pipeline_mode<synchronous>, transform_indices = @transform_6, window_bounds = array<i64: 1, 128>}, {pipeline_mode = #tpu.pipeline_mode<synchronous>, transform_indices = @transform_7, window_bounds = array<i64: 128, 128>}, {pipeline_mode = #tpu.pipeline_mode<synchronous>, transform_indices = @transform_8, window_bounds = array<i64: 1, 128>}, {transform_indices = @transform_9, window_bounds = array<i64: 128, 128>}, {transform_indices = @transform_10, window_bounds = array<i64: 128, 128>}]} {
    %c0 = arith.constant 0 : index
    %c0_0 = arith.constant 0 : index
    %0 = vector.load %arg1[%c0, %c0_0] : memref<128x128xbf16, #tpu.memory_space<vmem>>, vector<128x128xbf16>
    %c0_1 = arith.constant 0 : index
    %c0_2 = arith.constant 0 : index
    %1 = vector.load %arg2[%c0_1, %c0_2] : memref<128x128xbf16, #tpu.memory_space<vmem>>, vector<128x128xbf16>
    %cst = arith.constant dense<0.000000e+00> : vector<128x128xf32>
    %2 = tpu.matmul %0, %1, %cst {dimension_numbers = #tpu.dot_dimension_numbers<[1], [0], [0], [1], [0, 0, 1, 1], [], []>} : vector<128x128xbf16>, vector<128x128xbf16>, vector<128x128xf32> -> vector<128x128xf32>
    %c0_3 = arith.constant 0 : index
    %c0_4 = arith.constant 0 : index
    %3 = vector.load %arg3[%c0_3, %c0_4] : memref<1x128xf32, #tpu.memory_space<vmem>>, vector<1x128xf32>
    %4 = vector.broadcast %3 : vector<1x128xf32> to vector<128x128xf32>
    %5 = arith.addf %2, %4 : vector<128x128xf32>
    %cst_5 = arith.constant 0.000000e+00 : f32
    %6 = vector.broadcast %cst_5 : f32 to vector<128x128xf32>
    %7 = arith.maximumf %5, %6 : vector<128x128xf32>
    %8 = arith.truncf %7 : vector<128x128xf32> to vector<128x128xbf16>
    %c0_6 = arith.constant 0 : index
    %c0_7 = arith.constant 0 : index
    %9 = vector.load %arg4[%c0_6, %c0_7] : memref<128x128xbf16, #tpu.memory_space<vmem>>, vector<128x128xbf16>
    %cst_8 = arith.constant dense<0.000000e+00> : vector<128x128xf32>
    %10 = tpu.matmul %8, %9, %cst_8 {dimension_numbers = #tpu.dot_dimension_numbers<[1], [0], [0], [1], [0, 0, 1, 1], [], []>} : vector<128x128xbf16>, vector<128x128xbf16>, vector<128x128xf32> -> vector<128x128xf32>
    %c0_9 = arith.constant 0 : index
    %c0_10 = arith.constant 0 : index
    %11 = vector.load %arg5[%c0_9, %c0_10] : memref<1x128xf32, #tpu.memory_space<vmem>>, vector<1x128xf32>
    %12 = vector.broadcast %11 : vector<1x128xf32> to vector<128x128xf32>
    %13 = arith.addf %10, %12 : vector<128x128xf32>
    %cst_11 = arith.constant 0.000000e+00 : f32
    %14 = vector.broadcast %cst_11 : f32 to vector<128x128xf32>
    %15 = arith.maximumf %13, %14 : vector<128x128xf32>
    %16 = arith.truncf %15 : vector<128x128xf32> to vector<128x128xbf16>
    %c0_12 = arith.constant 0 : index
    %c0_13 = arith.constant 0 : index
    %17 = vector.load %arg6[%c0_12, %c0_13] : memref<128x128xbf16, #tpu.memory_space<vmem>>, vector<128x128xbf16>
    %cst_14 = arith.constant dense<0.000000e+00> : vector<128x128xf32>
    %18 = tpu.matmul %16, %17, %cst_14 {dimension_numbers = #tpu.dot_dimension_numbers<[1], [0], [0], [1], [0, 0, 1, 1], [], []>} : vector<128x128xbf16>, vector<128x128xbf16>, vector<128x128xf32> -> vector<128x128xf32>
    %c0_15 = arith.constant 0 : index
    %c0_16 = arith.constant 0 : index
    %19 = vector.load %arg7[%c0_15, %c0_16] : memref<1x128xf32, #tpu.memory_space<vmem>>, vector<1x128xf32>
    %20 = vector.broadcast %19 : vector<1x128xf32> to vector<128x128xf32>
    %21 = arith.addf %18, %20 : vector<128x128xf32>
    %cst_17 = arith.constant 0.000000e+00 : f32
    %22 = vector.broadcast %cst_17 : f32 to vector<128x128xf32>
    %23 = arith.maximumf %21, %22 : vector<128x128xf32>
    %24 = arith.addf %7, %23 : vector<128x128xf32>
    %cst_18 = arith.constant 0.000000e+00 : f32
    %25 = vector.broadcast %cst_18 : f32 to vector<128x128xf32>
    %26 = arith.maximumf %24, %25 : vector<128x128xf32>
    %27 = arith.truncf %26 : vector<128x128xf32> to vector<128x128xbf16>
    %c0_19 = arith.constant 0 : index
    %c0_20 = arith.constant 0 : index
    %28 = vector.load %arg10[%c0_19, %c0_20] : memref<128x128xbf16, #tpu.memory_space<vmem>>, vector<128x128xbf16>
    tpu.vector_store %arg10[%c0_19, %c0_20], %27 {strides = array<i32>} : memref<128x128xbf16, #tpu.memory_space<vmem>>, vector<128x128xbf16>,
    %c0_21 = arith.constant 0 : index
    %c0_22 = arith.constant 0 : index
    %29 = vector.load %arg8[%c0_21, %c0_22] : memref<128x128xbf16, #tpu.memory_space<vmem>>, vector<128x128xbf16>
    %cst_23 = arith.constant dense<0.000000e+00> : vector<128x128xf32>
    %30 = tpu.matmul %27, %29, %cst_23 {dimension_numbers = #tpu.dot_dimension_numbers<[1], [0], [0], [1], [0, 0, 1, 1], [], []>} : vector<128x128xbf16>, vector<128x128xbf16>, vector<128x128xf32> -> vector<128x128xf32>
    %c0_24 = arith.constant 0 : index
    %c0_25 = arith.constant 0 : index
    %31 = vector.load %arg9[%c0_24, %c0_25] : memref<1x128xf32, #tpu.memory_space<vmem>>, vector<1x128xf32>
    %32 = vector.broadcast %31 : vector<1x128xf32> to vector<128x128xf32>
    %33 = arith.addf %30, %32 : vector<128x128xf32>
    %cst_26 = arith.constant 0.000000e+00 : f32
    %34 = vector.broadcast %cst_26 : f32 to vector<128x128xf32>
    %35 = arith.maximumf %33, %34 : vector<128x128xf32>
    %c0_27 = arith.constant 0 : index
    %c0_28 = arith.constant 0 : index
    %36 = vector.load %arg11[%c0_27, %c0_28] : memref<128x128xf32, #tpu.memory_space<vmem>>, vector<128x128xf32>
    tpu.vector_store %arg11[%c0_27, %c0_28], %35 {strides = array<i32>} : memref<128x128xf32, #tpu.memory_space<vmem>>, vector<128x128xf32>,
    return
  }
  func.func @transform_0(%arg0: i32) -> (i32, i32) {
    %c0_i32 = arith.constant 0 : i32
    %c0_i32_0 = arith.constant 0 : i32
    return %arg0, %c0_i32 : i32, i32
  }
  func.func @transform_1(%arg0: i32) -> (i32, i32) {
    %c0_i32 = arith.constant 0 : i32
    %c0_i32_0 = arith.constant 0 : i32
    %c0_i32_1 = arith.constant 0 : i32
    return %c0_i32, %c0_i32_0 : i32, i32
  }
  func.func @transform_2(%arg0: i32) -> (i32, i32) {
    %c0_i32 = arith.constant 0 : i32
    %c0_i32_0 = arith.constant 0 : i32
    %c0_i32_1 = arith.constant 0 : i32
    return %c0_i32, %c0_i32_0 : i32, i32
  }
  func.func @transform_3(%arg0: i32) -> (i32, i32) {
    %c0_i32 = arith.constant 0 : i32
    %c0_i32_0 = arith.constant 0 : i32
    %c0_i32_1 = arith.constant 0 : i32
    return %c0_i32, %c0_i32_0 : i32, i32
  }
  func.func @transform_4(%arg0: i32) -> (i32, i32) {
    %c0_i32 = arith.constant 0 : i32
    %c0_i32_0 = arith.constant 0 : i32
    %c0_i32_1 = arith.constant 0 : i32
    return %c0_i32, %c0_i32_0 : i32, i32
  }
  func.func @transform_5(%arg0: i32) -> (i32, i32) {
    %c0_i32 = arith.constant 0 : i32
    %c0_i32_0 = arith.constant 0 : i32
    %c0_i32_1 = arith.constant 0 : i32
    return %c0_i32, %c0_i32_0 : i32, i32
  }
  func.func @transform_6(%arg0: i32) -> (i32, i32) {
    %c0_i32 = arith.constant 0 : i32
    %c0_i32_0 = arith.constant 0 : i32
    %c0_i32_1 = arith.constant 0 : i32
    return %c0_i32, %c0_i32_0 : i32, i32
  }
  func.func @transform_7(%arg0: i32) -> (i32, i32) {
    %c0_i32 = arith.constant 0 : i32
    %c0_i32_0 = arith.constant 0 : i32
    %c0_i32_1 = arith.constant 0 : i32
    return %c0_i32, %c0_i32_0 : i32, i32
  }
  func.func @transform_8(%arg0: i32) -> (i32, i32) {
    %c0_i32 = arith.constant 0 : i32
    %c0_i32_0 = arith.constant 0 : i32
    %c0_i32_1 = arith.constant 0 : i32
    return %c0_i32, %c0_i32_0 : i32, i32
  }
  func.func @transform_9(%arg0: i32) -> (i32, i32) {
    %c0_i32 = arith.constant 0 : i32
    %c0_i32_0 = arith.constant 0 : i32
    return %arg0, %c0_i32 : i32, i32
  }
  func.func @transform_10(%arg0: i32) -> (i32, i32) {
    %c0_i32 = arith.constant 0 : i32
    %c0_i32_0 = arith.constant 0 : i32
    return %arg0, %c0_i32 : i32, i32
  }
}

module attributes {stable_mosaic.version = 11 : i64} {
  func.func @_c_branch_kernel(%arg0: i32, %arg1: i32, %arg2: memref<128x128xbf16, #tpu.memory_space<vmem>>, %arg3: memref<128x128xbf16, #tpu.memory_space<vmem>>, %arg4: memref<128x128xbf16, #tpu.memory_space<vmem>>, %arg5: memref<128x128xbf16, #tpu.memory_space<vmem>>, %arg6: memref<1x128xf32, #tpu.memory_space<vmem>>, %arg7: memref<128x128xbf16, #tpu.memory_space<vmem>>, %arg8: memref<1x128xf32, #tpu.memory_space<vmem>>, %arg9: memref<128x128xbf16, #tpu.memory_space<vmem>>, %arg10: memref<1x128xf32, #tpu.memory_space<vmem>>, %arg11: memref<128x128xbf16, #tpu.memory_space<vmem>>, %arg12: memref<128x128xbf16, #tpu.memory_space<vmem>>, %arg13: memref<1x128xf32, #tpu.memory_space<vmem>>, %arg14: memref<128x128xf32, #tpu.memory_space<vmem>>, %arg15: memref<128x128xf32, #tpu.memory_space<vmem>>) attributes {dimension_semantics = [#tpu.dimension_semantics<parallel>, #tpu.dimension_semantics<arbitrary>], iteration_bounds = array<i64: 2, 2>, scalar_prefetch = 0 : i64, scratch_operands = 1 : i64, tpu.core_type = #tpu.core_type<tc>, window_params = [{transform_indices = @transform_0, window_bounds = array<i64: 128, 128>}, {transform_indices = @transform_1, window_bounds = array<i64: 128, 128>}, {transform_indices = @transform_2, window_bounds = array<i64: 128, 128>}, {pipeline_mode = #tpu.pipeline_mode<synchronous>, transform_indices = @transform_3, window_bounds = array<i64: 128, 128>}, {pipeline_mode = #tpu.pipeline_mode<synchronous>, transform_indices = @transform_4, window_bounds = array<i64: 1, 128>}, {pipeline_mode = #tpu.pipeline_mode<synchronous>, transform_indices = @transform_5, window_bounds = array<i64: 128, 128>}, {pipeline_mode = #tpu.pipeline_mode<synchronous>, transform_indices = @transform_6, window_bounds = array<i64: 1, 128>}, {pipeline_mode = #tpu.pipeline_mode<synchronous>, transform_indices = @transform_7, window_bounds = array<i64: 128, 128>}, {pipeline_mode = #tpu.pipeline_mode<synchronous>, transform_indices = @transform_8, window_bounds = array<i64: 1, 128>}, {pipeline_mode = #tpu.pipeline_mode<synchronous>, transform_indices = @transform_9, window_bounds = array<i64: 128, 128>}, {pipeline_mode = #tpu.pipeline_mode<synchronous>, transform_indices = @transform_10, window_bounds = array<i64: 128, 128>}, {pipeline_mode = #tpu.pipeline_mode<synchronous>, transform_indices = @transform_11, window_bounds = array<i64: 1, 128>}, {transform_indices = @transform_12, window_bounds = array<i64: 128, 128>}]} {
    %c0_i32 = arith.constant 0 : i32
    %0 = arith.cmpi eq, %arg1, %c0_i32 : i32
    %1 = arith.extui %0 : i1 to i32
    %c0_i32_0 = arith.constant 0 : i32
    %2 = arith.cmpi ne, %1, %c0_i32_0 : i32
    scf.if %2 {
      %cst_9 = arith.constant 0.000000e+00 : f32
      %12 = vector.broadcast %cst_9 : f32 to vector<128x128xf32>
      %c0_10 = arith.constant 0 : index
      %c0_11 = arith.constant 0 : index
      %13 = vector.load %arg15[%c0_10, %c0_11] : memref<128x128xf32, #tpu.memory_space<vmem>>, vector<128x128xf32>
      tpu.vector_store %arg15[%c0_10, %c0_11], %12 {strides = array<i32>} : memref<128x128xf32, #tpu.memory_space<vmem>>, vector<128x128xf32>,
    } else {
    }
    %c0 = arith.constant 0 : index
    %c0_1 = arith.constant 0 : index
    %3 = vector.load %arg15[%c0, %c0_1] : memref<128x128xf32, #tpu.memory_space<vmem>>, vector<128x128xf32>
    %c0_2 = arith.constant 0 : index
    %c0_3 = arith.constant 0 : index
    %4 = vector.load %arg3[%c0_2, %c0_3] : memref<128x128xbf16, #tpu.memory_space<vmem>>, vector<128x128xbf16>
    %c0_4 = arith.constant 0 : index
    %c0_5 = arith.constant 0 : index
    %5 = vector.load %arg4[%c0_4, %c0_5] : memref<128x128xbf16, #tpu.memory_space<vmem>>, vector<128x128xbf16>
    %cst = arith.constant dense<0.000000e+00> : vector<128x128xf32>
    %6 = tpu.matmul %4, %5, %cst {dimension_numbers = #tpu.dot_dimension_numbers<[1], [0], [0], [1], [0, 0, 1, 1], [], []>} : vector<128x128xbf16>, vector<128x128xbf16>, vector<128x128xf32> -> vector<128x128xf32>
    %7 = arith.addf %3, %6 : vector<128x128xf32>
    %c0_6 = arith.constant 0 : index
    %c0_7 = arith.constant 0 : index
    %8 = vector.load %arg15[%c0_6, %c0_7] : memref<128x128xf32, #tpu.memory_space<vmem>>, vector<128x128xf32>
    tpu.vector_store %arg15[%c0_6, %c0_7], %7 {strides = array<i32>} : memref<128x128xf32, #tpu.memory_space<vmem>>, vector<128x128xf32>,
    %c1_i32 = arith.constant 1 : i32
    %9 = arith.cmpi eq, %arg1, %c1_i32 : i32
    %10 = arith.extui %9 : i1 to i32
    %c0_i32_8 = arith.constant 0 : i32
    %11 = arith.cmpi ne, %10, %c0_i32_8 : i32
    scf.if %11 {
      %c0_9 = arith.constant 0 : index
      %c0_10 = arith.constant 0 : index
      %12 = vector.load %arg2[%c0_9, %c0_10] : memref<128x128xbf16, #tpu.memory_space<vmem>>, vector<128x128xbf16>
      %c0_11 = arith.constant 0 : index
      %c0_12 = arith.constant 0 : index
      %13 = vector.load %arg5[%c0_11, %c0_12] : memref<128x128xbf16, #tpu.memory_space<vmem>>, vector<128x128xbf16>
      %cst_13 = arith.constant dense<0.000000e+00> : vector<128x128xf32>
      %14 = tpu.matmul %12, %13, %cst_13 {dimension_numbers = #tpu.dot_dimension_numbers<[1], [0], [0], [1], [0, 0, 1, 1], [], []>} : vector<128x128xbf16>, vector<128x128xbf16>, vector<128x128xf32> -> vector<128x128xf32>
      %c0_14 = arith.constant 0 : index
      %c0_15 = arith.constant 0 : index
      %15 = vector.load %arg6[%c0_14, %c0_15] : memref<1x128xf32, #tpu.memory_space<vmem>>, vector<1x128xf32>
      %16 = vector.broadcast %15 : vector<1x128xf32> to vector<128x128xf32>
      %17 = arith.addf %14, %16 : vector<128x128xf32>
      %cst_16 = arith.constant 0.000000e+00 : f32
      %18 = vector.broadcast %cst_16 : f32 to vector<128x128xf32>
      %19 = arith.maximumf %17, %18 : vector<128x128xf32>
      %20 = arith.truncf %19 : vector<128x128xf32> to vector<128x128xbf16>
      %c0_17 = arith.constant 0 : index
      %c0_18 = arith.constant 0 : index
      %21 = vector.load %arg7[%c0_17, %c0_18] : memref<128x128xbf16, #tpu.memory_space<vmem>>, vector<128x128xbf16>
      %cst_19 = arith.constant dense<0.000000e+00> : vector<128x128xf32>
      %22 = tpu.matmul %20, %21, %cst_19 {dimension_numbers = #tpu.dot_dimension_numbers<[1], [0], [0], [1], [0, 0, 1, 1], [], []>} : vector<128x128xbf16>, vector<128x128xbf16>, vector<128x128xf32> -> vector<128x128xf32>
      %c0_20 = arith.constant 0 : index
      %c0_21 = arith.constant 0 : index
      %23 = vector.load %arg8[%c0_20, %c0_21] : memref<1x128xf32, #tpu.memory_space<vmem>>, vector<1x128xf32>
      %24 = vector.broadcast %23 : vector<1x128xf32> to vector<128x128xf32>
      %25 = arith.addf %22, %24 : vector<128x128xf32>
      %cst_22 = arith.constant 0.000000e+00 : f32
      %26 = vector.broadcast %cst_22 : f32 to vector<128x128xf32>
      %27 = arith.maximumf %25, %26 : vector<128x128xf32>
      %28 = arith.truncf %27 : vector<128x128xf32> to vector<128x128xbf16>
      %c0_23 = arith.constant 0 : index
      %c0_24 = arith.constant 0 : index
      %29 = vector.load %arg9[%c0_23, %c0_24] : memref<128x128xbf16, #tpu.memory_space<vmem>>, vector<128x128xbf16>
      %cst_25 = arith.constant dense<0.000000e+00> : vector<128x128xf32>
      %30 = tpu.matmul %28, %29, %cst_25 {dimension_numbers = #tpu.dot_dimension_numbers<[1], [0], [0], [1], [0, 0, 1, 1], [], []>} : vector<128x128xbf16>, vector<128x128xbf16>, vector<128x128xf32> -> vector<128x128xf32>
      %c0_26 = arith.constant 0 : index
      %c0_27 = arith.constant 0 : index
      %31 = vector.load %arg10[%c0_26, %c0_27] : memref<1x128xf32, #tpu.memory_space<vmem>>, vector<1x128xf32>
      %32 = vector.broadcast %31 : vector<1x128xf32> to vector<128x128xf32>
      %33 = arith.addf %30, %32 : vector<128x128xf32>
      %cst_28 = arith.constant 0.000000e+00 : f32
      %34 = vector.broadcast %cst_28 : f32 to vector<128x128xf32>
      %35 = arith.maximumf %33, %34 : vector<128x128xf32>
      %36 = arith.addf %19, %35 : vector<128x128xf32>
      %cst_29 = arith.constant 0.000000e+00 : f32
      %37 = vector.broadcast %cst_29 : f32 to vector<128x128xf32>
      %38 = arith.maximumf %36, %37 : vector<128x128xf32>
      %39 = arith.truncf %38 : vector<128x128xf32> to vector<128x128xbf16>
      %c0_30 = arith.constant 0 : index
      %c0_31 = arith.constant 0 : index
      %40 = vector.load %arg11[%c0_30, %c0_31] : memref<128x128xbf16, #tpu.memory_space<vmem>>, vector<128x128xbf16>
      %cst_32 = arith.constant dense<0.000000e+00> : vector<128x128xf32>
      %41 = tpu.matmul %39, %40, %cst_32 {dimension_numbers = #tpu.dot_dimension_numbers<[1], [0], [0], [1], [0, 0, 1, 1], [], []>} : vector<128x128xbf16>, vector<128x128xbf16>, vector<128x128xf32> -> vector<128x128xf32>
      %c0_33 = arith.constant 0 : index
      %c0_34 = arith.constant 0 : index
      %42 = vector.load %arg15[%c0_33, %c0_34] : memref<128x128xf32, #tpu.memory_space<vmem>>, vector<128x128xf32>
      %43 = arith.truncf %42 : vector<128x128xf32> to vector<128x128xbf16>
      %c0_35 = arith.constant 0 : index
      %c0_36 = arith.constant 0 : index
      %44 = vector.load %arg12[%c0_35, %c0_36] : memref<128x128xbf16, #tpu.memory_space<vmem>>, vector<128x128xbf16>
      %cst_37 = arith.constant dense<0.000000e+00> : vector<128x128xf32>
      %45 = tpu.matmul %43, %44, %cst_37 {dimension_numbers = #tpu.dot_dimension_numbers<[1], [0], [0], [1], [0, 0, 1, 1], [], []>} : vector<128x128xbf16>, vector<128x128xbf16>, vector<128x128xf32> -> vector<128x128xf32>
      %46 = arith.addf %41, %45 : vector<128x128xf32>
      %c0_38 = arith.constant 0 : index
      %c0_39 = arith.constant 0 : index
      %47 = vector.load %arg13[%c0_38, %c0_39] : memref<1x128xf32, #tpu.memory_space<vmem>>, vector<1x128xf32>
      %48 = vector.broadcast %47 : vector<1x128xf32> to vector<128x128xf32>
      %49 = arith.addf %46, %48 : vector<128x128xf32>
      %cst_40 = arith.constant 0.000000e+00 : f32
      %50 = vector.broadcast %cst_40 : f32 to vector<128x128xf32>
      %51 = arith.maximumf %49, %50 : vector<128x128xf32>
      %c0_41 = arith.constant 0 : index
      %c0_42 = arith.constant 0 : index
      %52 = vector.load %arg14[%c0_41, %c0_42] : memref<128x128xf32, #tpu.memory_space<vmem>>, vector<128x128xf32>
      tpu.vector_store %arg14[%c0_41, %c0_42], %51 {strides = array<i32>} : memref<128x128xf32, #tpu.memory_space<vmem>>, vector<128x128xf32>,
    } else {
    }
    return
  }
  func.func @transform_0(%arg0: i32, %arg1: i32) -> (i32, i32) {
    %c0_i32 = arith.constant 0 : i32
    %c0_i32_0 = arith.constant 0 : i32
    return %arg0, %c0_i32 : i32, i32
  }
  func.func @transform_1(%arg0: i32, %arg1: i32) -> (i32, i32) {
    %c0_i32 = arith.constant 0 : i32
    return %arg0, %arg1 : i32, i32
  }
  func.func @transform_2(%arg0: i32, %arg1: i32) -> (i32, i32) {
    %c0_i32 = arith.constant 0 : i32
    %c0_i32_0 = arith.constant 0 : i32
    return %arg1, %c0_i32 : i32, i32
  }
  func.func @transform_3(%arg0: i32, %arg1: i32) -> (i32, i32) {
    %c0_i32 = arith.constant 0 : i32
    %c0_i32_0 = arith.constant 0 : i32
    %c0_i32_1 = arith.constant 0 : i32
    return %c0_i32, %c0_i32_0 : i32, i32
  }
  func.func @transform_4(%arg0: i32, %arg1: i32) -> (i32, i32) {
    %c0_i32 = arith.constant 0 : i32
    %c0_i32_0 = arith.constant 0 : i32
    %c0_i32_1 = arith.constant 0 : i32
    return %c0_i32, %c0_i32_0 : i32, i32
  }
  func.func @transform_5(%arg0: i32, %arg1: i32) -> (i32, i32) {
    %c0_i32 = arith.constant 0 : i32
    %c0_i32_0 = arith.constant 0 : i32
    %c0_i32_1 = arith.constant 0 : i32
    return %c0_i32, %c0_i32_0 : i32, i32
  }
  func.func @transform_6(%arg0: i32, %arg1: i32) -> (i32, i32) {
    %c0_i32 = arith.constant 0 : i32
    %c0_i32_0 = arith.constant 0 : i32
    %c0_i32_1 = arith.constant 0 : i32
    return %c0_i32, %c0_i32_0 : i32, i32
  }
  func.func @transform_7(%arg0: i32, %arg1: i32) -> (i32, i32) {
    %c0_i32 = arith.constant 0 : i32
    %c0_i32_0 = arith.constant 0 : i32
    %c0_i32_1 = arith.constant 0 : i32
    return %c0_i32, %c0_i32_0 : i32, i32
  }
  func.func @transform_8(%arg0: i32, %arg1: i32) -> (i32, i32) {
    %c0_i32 = arith.constant 0 : i32
    %c0_i32_0 = arith.constant 0 : i32
    %c0_i32_1 = arith.constant 0 : i32
    return %c0_i32, %c0_i32_0 : i32, i32
  }
  func.func @transform_9(%arg0: i32, %arg1: i32) -> (i32, i32) {
    %c0_i32 = arith.constant 0 : i32
    %c0_i32_0 = arith.constant 0 : i32
    %c0_i32_1 = arith.constant 0 : i32
    return %c0_i32, %c0_i32_0 : i32, i32
  }
  func.func @transform_10(%arg0: i32, %arg1: i32) -> (i32, i32) {
    %c0_i32 = arith.constant 0 : i32
    %c0_i32_0 = arith.constant 0 : i32
    %c0_i32_1 = arith.constant 0 : i32
    return %c0_i32, %c0_i32_0 : i32, i32
  }
  func.func @transform_11(%arg0: i32, %arg1: i32) -> (i32, i32) {
    %c0_i32 = arith.constant 0 : i32
    %c0_i32_0 = arith.constant 0 : i32
    %c0_i32_1 = arith.constant 0 : i32
    return %c0_i32, %c0_i32_0 : i32, i32
  }
  func.func @transform_12(%arg0: i32, %arg1: i32) -> (i32, i32) {
    %c0_i32 = arith.constant 0 : i32
    %c0_i32_0 = arith.constant 0 : i32
    return %arg0, %c0_i32 : i32, i32
  }
}

</mosaic_0001>

<bundles_post_ra>
// kernel: feature_gen_block.2
= control target key start
LH: loop header
LB: loop body
LE: loop exit
PB: predicated region body
PF: predicated region fallthrough
CT: control target
= control target key end

     0   :  { %s1851_s13 = smov 0   ;;  %s2155_s0 = inlined_call_operand.vmem [shape: bf16[256,128], index: 0, kind: input, shape index: {}]   ;;  %s2156_s1 = inlined_call_operand.vmem [shape: bf16[128,128], index: 1, kind: input, shape index: {}]   ;;  %s2157_s2 = inlined_call_operand.vmem [shape: f32[1,128], index: 2, kind: input, shape index: {}]   ;;  %s2158_s3 = inlined_call_operand.vmem [shape: bf16[128,128], index: 3, kind: input, shape index: {}]   ;;  %s2159_s4 = inlined_call_operand.vmem [shape: f32[1,128], index: 4, kind: input, shape index: {}]   ;;  %s2160_s5 = inlined_call_operand.vmem [shape: bf16[128,128], index: 5, kind: input, shape index: {}]   ;;  %s2161_s6 = inlined_call_operand.vmem [shape: f32[1,128], index: 6, kind: input, shape index: {}]   ;;  %s2162_s7 = inlined_call_operand.vmem [shape: bf16[128,128], index: 7, kind: input, shape index: {}]   ;;  %s2163_s8 = inlined_call_operand.vmem [shape: f32[1,128], index: 8, kind: input, shape index: {}]   ;;  %s2164_s9 = inlined_call_operand.vmem [shape: bf16[256,128], index: 9, kind: output, shape index: {0}]   ;;  %s2165_s10 = inlined_call_operand.vmem [shape: f32[256,128], index: 10, kind: output, shape index: {1}]  }
   0x1 LB: > { %s1412_s14 = sadd.s32 4294967295, %s1794_s13   ;;  %p1416_p0 = scmp.ge.s32.totalorder %s1794_s13, 1  ;;  %s1794_s13 = sphi %s1851_s13, %s21_s13  }
   0x2   : > { %p316_p1 = scmp.lt.s32.totalorder %s1794_s13, 3 }
   0x4   : > { %p317_p2 = pnand %p1416_p0, %p316_p1 }
   0x5   : > { %v1748_v0 = vld [vmem:[%s2156_s1] sm:$0xff] (!%p317_p2)   ;;  %s1417_s17 = sshll.u32 (!%p317_p2), %s1412_s14, 4  ;;  %v1749_v1 = vld [vmem:[%s2156_s1 + $0x8] sm:$0xff] (!%p317_p2)   ;;  %v1750_v2 = vld [vmem:[%s2156_s1 + $0x10] sm:$0xff] (!%p317_p2)  }
   0x6   : > { %320 = sbr.rel (%p317_p2) target bundleno = 952 (0x3b8), region = 56  ;;  %p360_p3 = scmp.lt.s32.totalorder (!%p317_p2), %s1417_s17, 31  ;;  %1612 = vmatprep.subr.bf16.mxu0 (!%p317_p2), %v1748_v0  ;;  %v1751_v3 = vld [vmem:[%s2156_s1 + $0x18] sm:$0xff] (!%p317_p2)   ;;  %v1752_v5 = vld [vmem:[%s2156_s1 + $0x20] sm:$0xff] (!%p317_p2)   ;;  %v1753_v6 = vld [vmem:[%s2156_s1 + $0x28] sm:$0xff] (!%p317_p2)  }
   0x7   : > { %1613 = vmatpush3.bf16.msra.mxu0 (!%p317_p2), %v1748_v0  ;;  %v1764_v7 = vld [vmem:[%s2158_s3] sm:$0xff] (!%p317_p2)   ;;  %v1765_v8 = vld [vmem:[%s2158_s3 + $0x8] sm:$0xff] (!%p317_p2)   ;;  %v1754_v9 = vld [vmem:[%s2156_s1 + $0x30] sm:$0xff] (!%p317_p2)  }
   0x8   : > { %1614 = vmatprep.subr.bf16.mxu0 (!%p317_p2), %v1749_v1  ;;  %1644 = vmatprep.subr.bf16.mxu1 (!%p317_p2), %v1764_v7  ;;  %v1766_v10 = vld [vmem:[%s2158_s3 + $0x10] sm:$0xff] (!%p317_p2)   ;;  %v1755_v11 = vld [vmem:[%s2156_s1 + $0x38] sm:$0xff] (!%p317_p2)   ;;  %v1768_v13 = vld [vmem:[%s2158_s3 + $0x20] sm:$0xff] (!%p317_p2)  }
   0x9   : > { %1645 = vmatpush3.bf16.msra.mxu1 (!%p317_p2), %v1764_v7  ;;  %v1767_v12 = vld [vmem:[%s2158_s3 + $0x18] sm:$0xff] (!%p317_p2)   ;;  %v1769_v16 = vld [vmem:[%s2158_s3 + $0x28] sm:$0xff] (!%p317_p2)   ;;  %v1770_v22 = vld [vmem:[%s2158_s3 + $0x30] sm:$0xff] (!%p317_p2)  }
   0xa   : > { %1646 = vmatprep.subr.bf16.mxu1 (!%p317_p2), %v1765_v8  ;;  %v1771_v23 = vld [vmem:[%s2158_s3 + $0x38] sm:$0xff] (!%p317_p2)   ;;  %v1772_v24 = vld [vmem:[%s2160_s5] sm:$0xff] (!%p317_p2)   ;;  %v1773_v25 = vld [vmem:[%s2160_s5 + $0x8] sm:$0xff] (!%p317_p2)  }
   0xb   : > { %1615 = vmatpush3.bf16.msra.mxu0 (!%p317_p2), %v1749_v1  ;;  %v1774_v26 = vld [vmem:[%s2160_s5 + $0x10] sm:$0xff] (!%p317_p2)   ;;  %v1775_v27 = vld [vmem:[%s2160_s5 + $0x18] sm:$0xff] (!%p317_p2)   ;;  %v1776_v28 = vld [vmem:[%s2160_s5 + $0x20] sm:$0xff] (!%p317_p2)  }
   0xc   : > { %1616 = vmatprep.subr.bf16.mxu0 (!%p317_p2), %v1750_v2  ;;  %v1777_v29 = vld [vmem:[%s2160_s5 + $0x28] sm:$0xff] (!%p317_p2)   ;;  %v1423_v30 = vld [vmem:[%s2157_s2] ss:$0 sm:$0xff] (!%p317_p2) }
   0xd   : > { %s2167_s17 = smov (!%p360_p3, %s1417_s17), 31  ;;  %1647 = vmatpush3.bf16.msra.mxu1 %v1765_v8 }
   0xe   : > { %s1418_s22 = sshll.u32 %s2167_s17, 2  ;;  %1648 = vmatprep.subr.bf16.mxu1 %v1766_v10  ;;  %s1422_s27 = sshll.u32 %s2167_s17, 3 }
   0xf   : > { %s1876_s25 = scalar_lea.vmem %s2155_s0, %s1418_s22  ;;  %1617 = vmatpush3.bf16.msra.mxu0 %v1750_v2  ;;  %s2082_s24 = scalar_lea.vmem %s2164_s9, %s1418_s22 }
  0x10   : > { %v1756_v4 = vld [vmem:[%s1876_s25] sm:$0xff]   ;;  %1618 = vmatprep.subr.bf16.mxu0 %v1751_v3  ;;  %v1757_v14 = vld [vmem:[%s1876_s25 + $0x8] sm:$0xff]   ;;  %v1758_v15 = vld [vmem:[%s1876_s25 + $0x10] sm:$0xff]   ;;  %s2134_s30 = scalar_lea.vmem %s2165_s10, %s1422_s27 }
  0x11   : > { %1628 = vmatprep.mubr.bf16.mxu0 %v1756_v4  ;;  %1649 = vmatpush3.bf16.msra.mxu1 %v1766_v10  ;;  %v1759_v17 = vld [vmem:[%s1876_s25 + $0x18] sm:$0xff]   ;;  %v1760_v18 = vld [vmem:[%s1876_s25 + $0x20] sm:$0xff]   ;;  %v1761_v19 = vld [vmem:[%s1876_s25 + $0x28] sm:$0xff]  }
  0x12   : > { %1650 = vmatprep.subr.bf16.mxu1 %v1767_v12  ;;  %v1762_v20 = vld [vmem:[%s1876_s25 + $0x30] sm:$0xff]   ;;  %v1763_v21 = vld [vmem:[%s1876_s25 + $0x38] sm:$0xff]  }
  0x13   : > { %1619 = vmatpush3.bf16.msra.mxu0 %v1751_v3 }
  0x14   : > { %1620 = vmatprep.subr.bf16.mxu0 %v1752_v5 }
  0x15   : > { %1651 = vmatpush3.bf16.msra.mxu1 %v1767_v12 }
  0x16   : > { %1652 = vmatprep.subr.bf16.mxu1 %v1768_v13 }
  0x17   : > { %1621 = vmatpush3.bf16.msra.mxu0 %v1752_v5 }
  0x18   : > { %1622 = vmatprep.subr.bf16.mxu0 %v1753_v6 }
  0x19   : > { %1653 = vmatpush3.bf16.msra.mxu1 %v1768_v13 }
  0x1a   : > { %1654 = vmatprep.subr.bf16.mxu1 %v1769_v16 }
  0x1b   : > { %1623 = vmatpush3.bf16.msra.mxu0 %v1753_v6 }
  0x1c   : > { %1624 = vmatprep.subr.bf16.mxu0 %v1754_v9 }
  0x1d   : > { %1655 = vmatpush3.bf16.msra.mxu1 %v1769_v16 }
  0x1e   : > { %1656 = vmatprep.subr.bf16.mxu1 %v1770_v22 }
  0x1f   : > { %1625 = vmatpush3.bf16.msra.mxu0 %v1754_v9 }
  0x20   : > { %1626 = vmatprep.subr.bf16.mxu0 %v1755_v11 }
  0x21   : > { %1657 = vmatpush3.bf16.msra.mxu1 %v1770_v22 }
  0x22   : > { %1658 = vmatprep.subr.bf16.mxu1 %v1771_v23 }
  0x23   : > { %1627 = vmatpush3.bf16.msra.mxu0 %v1755_v11 }
  0x24   : > { %1676 = vmatprep.subr.bf16.mxu0 %v1772_v24 }
  0x25   : > { %1659 = vmatpush3.bf16.msra.mxu1 %v1771_v23  ;;  %v1778_v23 = vld [vmem:[%s2160_s5 + $0x30] sm:$0xff]  }
  0x26   : > { %1629 = vmatmul.mubr.bf16.vlgmr.msra.gmra.mrb[0].mxu0 %v1757_v14 }
  0x27   : > { %1632 = vmatprep.mubr.bf16.mxu0 %v1758_v15  ;;  %1677 = vmatpush3.bf16.msra.mxu0 %v1772_v24  ;;  %v1779_v24 = vld [vmem:[%s2160_s5 + $0x38] sm:$0xff]  }
  0x28   : > { %1678 = vmatprep.subr.bf16.mxu0 %v1773_v25 }
  0x2b   : > { %1679 = vmatpush3.bf16.msra.mxu0 %v1773_v25  ;;  %v1780_v25 = vld [vmem:[%s2162_s7] sm:$0xff]  }
  0x2c   : > { %1680 = vmatprep.subr.bf16.mxu0 %v1774_v26  ;;  %1708 = vmatprep.subr.bf16.mxu1 %v1780_v25 }
  0x2e   : > { %1633 = vmatmul.mubr.bf16.gmra.mrb[4].mxu0 %v1759_v17 }
  0x2f   : > { %1636 = vmatprep.mubr.bf16.mxu0 %v1760_v18  ;;  %1681 = vmatpush3.bf16.msra.mxu0 %v1774_v26  ;;  %v1781_v26 = vld [vmem:[%s2162_s7 + $0x8] sm:$0xff]  }
  0x30   : > { %1682 = vmatprep.subr.bf16.mxu0 %v1775_v27 }
  0x33   : > { %1683 = vmatpush3.bf16.msra.mxu0 %v1775_v27  ;;  %v1782_v27 = vld [vmem:[%s2162_s7 + $0x10] sm:$0xff]  }
  0x34   : > { %1684 = vmatprep.subr.bf16.mxu0 %v1776_v28 }
  0x36   : > { %1637 = vmatmul.mubr.bf16.gmra.mrb[8].mxu0 %v1761_v19 }
  0x37   : > { %1640 = vmatprep.mubr.bf16.mxu0 %v1762_v20  ;;  %1685 = vmatpush3.bf16.msra.mxu0 %v1776_v28  ;;  %v1783_v28 = vld [vmem:[%s2162_s7 + $0x18] sm:$0xff]  }
  0x38   : > { %1686 = vmatprep.subr.bf16.mxu0 %v1777_v29 }
  0x3b   : > { %1687 = vmatpush3.bf16.msra.mxu0 %v1777_v29  ;;  %v1784_v29 = vld [vmem:[%s2162_s7 + $0x20] sm:$0xff]  }
  0x3c   : > { %1688 = vmatprep.subr.bf16.mxu0 %v1778_v23 }
  0x3e   : > { %1641 = vmatmul.mubr.bf16.gmra.mrb[12].mxu0 %v1763_v21 }
  0x3f   : > { %1689 = vmatpush3.bf16.msra.mxu0 %v1778_v23 }
  0x40   : > { %1690 = vmatprep.subr.bf16.mxu0 %v1779_v24 }
  0x43   : > { %1691 = vmatpush3.bf16.msra.mxu0 %v1779_v24 }
  0xf9   : > { %v1630_v31 = vpop.f32.mrb[0].mxu0 }
  0xfa   : > { %v547_v32 = vpop.f32.mrb[1].mxu0  ;;  %v1948_v35 = vadd.f32 %v1630_v31, %v1423_v30 }
  0xfb   : > { %v1946_v33 = vadd.f32 %v1423_v30, %v547_v32  ;;  %v1631_v34 = vpop.f32.mrb[2].mxu0 }
  0xfc   : > { %v1950_v36 = vadd.f32 %v1631_v34, %v1423_v30  ;;  %v550_v37 = vpop.f32.mrb[3].mxu0  ;;  %v612_v42 = vmax.f32 %v1948_v35, 0.0 }
  0xfd   : > { %v1952_v38 = vadd.f32 %v1423_v30, %v550_v37  ;;  %v610_v40 = vmax.f32 %v1946_v33, 0.0 }
  0xfe   : > { %v613_v39 = vmax.f32 %v1950_v36, 0.0 }
  0xff   : > { %v611_v41 = vmax.f32 %v1952_v38, 0.0 }
 0x100   : > { %v627_v45 = vpack.c.bf16 %v613_v39, %v612_v42 }
 0x101   : > { %v1634_v43 = vpop.f32.mrb[4].mxu0  ;;  %v626_v44 = vpack.c.bf16 %v611_v41, %v610_v40 }
 0x102   : > { %v563_v46 = vpop.f32.mrb[5].mxu0  ;;  %v1968_v49 = vadd.f32 %v1634_v43, %v1423_v30 }
 0x103   : > { %v1966_v47 = vadd.f32 %v1423_v30, %v563_v46  ;;  %v1635_v48 = vpop.f32.mrb[6].mxu0  ;;  %1660 = vmatprep.mubr.bf16.mxu1 %v626_v44 }
 0x104   : > { %v1970_v50 = vadd.f32 %v1635_v48, %v1423_v30  ;;  %v566_v51 = vpop.f32.mrb[7].mxu0  ;;  %1661 = vmatmul.mubr.bf16.vlgmr.msra.gmra.mrb[0].mxu1 %v627_v45  ;;  %v616_v56 = vmax.f32 %v1968_v49, 0.0 }
 0x105   : > { %v1972_v52 = vadd.f32 %v1423_v30, %v566_v51  ;;  %v614_v54 = vmax.f32 %v1966_v47, 0.0  ;;  %1709 = vmatpush3.bf16.msra.mxu1 %v1780_v25 }
 0x106   : > { %v617_v53 = vmax.f32 %v1970_v50, 0.0  ;;  %1710 = vmatprep.subr.bf16.mxu1 %v1781_v26 }
 0x107   : > { %v615_v55 = vmax.f32 %v1972_v52, 0.0 }
 0x108   : > { %v629_v59 = vpack.c.bf16 %v617_v53, %v616_v56 }
 0x109   : > { %v628_v57 = vpack.c.bf16 %v615_v55, %v614_v54  ;;  %v1638_v58 = vpop.f32.mrb[8].mxu0  ;;  %1711 = vmatpush3.bf16.msra.mxu1 %v1781_v26 }
 0x10a   : > { %v579_v60 = vpop.f32.mrb[9].mxu0  ;;  %v1988_v63 = vadd.f32 %v1638_v58, %v1423_v30  ;;  %1712 = vmatprep.subr.bf16.mxu1 %v1782_v27 }
 0x10b   : > { %v1986_v61 = vadd.f32 %v1423_v30, %v579_v60  ;;  %v1639_v62 = vpop.f32.mrb[10].mxu0  ;;  %1664 = vmatprep.mubr.bf16.mxu1 %v628_v57 }
 0x10c   : > { %v1990_v0 = vadd.f32 %v1639_v62, %v1423_v30  ;;  %v582_v1 = vpop.f32.mrb[11].mxu0  ;;  %1665 = vmatmul.mubr.bf16.gmra.mrb[4].mxu1 %v629_v59  ;;  %v620_v6 = vmax.f32 %v1988_v63, 0.0 }
 0x10d   : > { %v1992_v2 = vadd.f32 %v1423_v30, %v582_v1  ;;  %v618_v4 = vmax.f32 %v1986_v61, 0.0  ;;  %1713 = vmatpush3.bf16.msra.mxu1 %v1782_v27 }
 0x10e   : > { %v621_v3 = vmax.f32 %v1990_v0, 0.0  ;;  %1714 = vmatprep.subr.bf16.mxu1 %v1783_v28 }
 0x10f   : > { %v619_v5 = vmax.f32 %v1992_v2, 0.0 }
 0x110   : > { %v631_v9 = vpack.c.bf16 %v621_v3, %v620_v6 }
 0x111   : > { %v630_v7 = vpack.c.bf16 %v619_v5, %v618_v4  ;;  %v1642_v8 = vpop.f32.mrb[12].mxu0  ;;  %1715 = vmatpush3.bf16.msra.mxu1 %v1783_v28 }
 0x112   : > { %v595_v10 = vpop.f32.mrb[13].mxu0  ;;  %v2008_v13 = vadd.f32 %v1642_v8, %v1423_v30  ;;  %1716 = vmatprep.subr.bf16.mxu1 %v1784_v29 }
 0x113   : > { %v2006_v11 = vadd.f32 %v1423_v30, %v595_v10  ;;  %v1643_v12 = vpop.f32.mrb[14].mxu0  ;;  %1668 = vmatprep.mubr.bf16.mxu1 %v630_v7 }
 0x114   : > { %v2010_v14 = vadd.f32 %v1643_v12, %v1423_v30  ;;  %v598_v15 = vpop.f32.mrb[15].mxu0  ;;  %1669 = vmatmul.mubr.bf16.gmra.mrb[8].mxu1 %v631_v9  ;;  %v624_v20 = vmax.f32 %v2008_v13, 0.0 }
 0x115   : > { %v2012_v16 = vadd.f32 %v1423_v30, %v598_v15  ;;  %v622_v18 = vmax.f32 %v2006_v11, 0.0  ;;  %1717 = vmatpush3.bf16.msra.mxu1 %v1784_v29  ;;  %v1440_v30 = vld [vmem:[%s2159_s4] ss:$0 sm:$0xff] }
 0x116   : > { %v625_v17 = vmax.f32 %v2010_v14, 0.0  ;;  %v1474_v11 = vld [vmem:[%s2163_s8] ss:$0 sm:$0xff] }
 0x117   : > { %v623_v19 = vmax.f32 %v2012_v16, 0.0 }
 0x118   : > { %v633_v22 = vpack.c.bf16 %v625_v17, %v624_v20 }
 0x119   : > { %v632_v21 = vpack.c.bf16 %v623_v19, %v622_v18 }
 0x11b   : > { %1672 = vmatprep.mubr.bf16.mxu1 %v632_v21 }
 0x11c   : > { %1673 = vmatmul.mubr.bf16.gmra.mrb[12].mxu1 %v633_v22 }
 0x1d7   : > { %v1662_v31 = vpop.f32.mrb[0].mxu1 }
 0x1d8   : > { %v748_v32 = vadd.f32 %v1662_v31, %v1440_v30  ;;  %v739_v34 = vpop.f32.mrb[1].mxu1 }
 0x1d9   : > { %v740_v37 = vadd.f32 %v1440_v30, %v739_v34  ;;  %v1663_v43 = vpop.f32.mrb[2].mxu1 }
 0x1da   : > { %v751_v44 = vadd.f32 %v1663_v43, %v1440_v30  ;;  %v742_v45 = vpop.f32.mrb[3].mxu1  ;;  %v804_v48 = vmax.f32 %v748_v32, 0.0 }
 0x1db   : > { %v743_v46 = vadd.f32 %v1440_v30, %v742_v45  ;;  %v802_v57 = vmax.f32 %v740_v37, 0.0 }
 0x1dc   : > { %v805_v51 = vmax.f32 %v751_v44, 0.0 }
 0x1dd   : > { %v803_v58 = vmax.f32 %v743_v46, 0.0 }
 0x1de   : > { %v819_v59 = vpack.c.bf16 %v805_v51, %v804_v48 }
 0x1df   : > { %v818_v60 = vpack.c.bf16 %v803_v58, %v802_v57  ;;  %v1666_v62 = vpop.f32.mrb[4].mxu1 }
 0x1e0   : > { %v764_v1 = vadd.f32 %v1666_v62, %v1440_v30  ;;  %v755_v7 = vpop.f32.mrb[5].mxu1 }
 0x1e1   : > { %v756_v8 = vadd.f32 %v1440_v30, %v755_v7  ;;  %v1667_v9 = vpop.f32.mrb[6].mxu1  ;;  %1692 = vmatprep.mubr.bf16.mxu0 %v818_v60 }
 0x1e2   : > { %v767_v10 = vadd.f32 %v1667_v9, %v1440_v30  ;;  %v758_v12 = vpop.f32.mrb[7].mxu1  ;;  %1693 = vmatmul.mubr.bf16.vlgmr.msra.gmra.mrb[16].mxu0 %v819_v59  ;;  %v808_v21 = vmax.f32 %v764_v1, 0.0 }
 0x1e3   : > { %v759_v15 = vadd.f32 %v1440_v30, %v758_v12  ;;  %v806_v23 = vmax.f32 %v756_v8, 0.0 }
 0x1e4   : > { %v809_v22 = vmax.f32 %v767_v10, 0.0 }
 0x1e5   : > { %v807_v24 = vmax.f32 %v759_v15, 0.0 }
 0x1e6   : > { %v821_v25 = vpack.c.bf16 %v809_v22, %v808_v21 }
 0x1e7   : > { %v820_v26 = vpack.c.bf16 %v807_v24, %v806_v23  ;;  %v1670_v27 = vpop.f32.mrb[8].mxu1  ;;  %v1785_v24 = vld [vmem:[%s2162_s7 + $0x28] sm:$0xff]  }
 0x1e8   : > { %v780_v28 = vadd.f32 %v1670_v27, %v1440_v30  ;;  %v771_v29 = vpop.f32.mrb[9].mxu1  ;;  %1718 = vmatprep.subr.bf16.mxu1 %v1785_v24 }
 0x1e9   : > { %v772_v31 = vadd.f32 %v1440_v30, %v771_v29  ;;  %v1671_v32 = vpop.f32.mrb[10].mxu1  ;;  %1696 = vmatprep.mubr.bf16.mxu0 %v820_v26  ;;  %1719 = vmatpush3.bf16.msra.mxu1 %v1785_v24  ;;  %v2062_v26 = vld [vmem:[%s2161_s6] ss:$0 sm:$0xff] }
 0x1ea   : > { %v783_v34 = vadd.f32 %v1671_v32, %v1440_v30  ;;  %v774_v37 = vpop.f32.mrb[11].mxu1  ;;  %1697 = vmatmul.mubr.bf16.gmra.mrb[20].mxu0 %v821_v25  ;;  %v812_v44 = vmax.f32 %v780_v28, 0.0  ;;  %v1786_v25 = vld [vmem:[%s2162_s7 + $0x30] sm:$0xff]  }
 0x1eb   : > { %v775_v43 = vadd.f32 %v1440_v30, %v774_v37  ;;  %v810_v46 = vmax.f32 %v772_v31, 0.0  ;;  %1720 = vmatprep.subr.bf16.mxu1 %v1786_v25 }
 0x1ec   : > { %v813_v45 = vmax.f32 %v783_v34, 0.0 }
 0x1ed   : > { %v811_v48 = vmax.f32 %v775_v43, 0.0  ;;  %1721 = vmatpush3.bf16.msra.mxu1 %v1786_v25 }
 0x1ee   : > { %v823_v51 = vpack.c.bf16 %v813_v45, %v812_v44 }
 0x1ef   : > { %v822_v57 = vpack.c.bf16 %v811_v48, %v810_v46  ;;  %v1674_v58 = vpop.f32.mrb[12].mxu1 }
 0x1f0   : > { %v796_v59 = vadd.f32 %v1674_v58, %v1440_v30  ;;  %v787_v60 = vpop.f32.mrb[13].mxu1 }
 0x1f1   : > { %v788_v62 = vadd.f32 %v1440_v30, %v787_v60  ;;  %v1675_v1 = vpop.f32.mrb[14].mxu1  ;;  %1700 = vmatprep.mubr.bf16.mxu0 %v822_v57 }
 0x1f2   : > { %v799_v7 = vadd.f32 %v1675_v1, %v1440_v30  ;;  %v790_v8 = vpop.f32.mrb[15].mxu1  ;;  %1701 = vmatmul.mubr.bf16.gmra.mrb[24].mxu0 %v823_v51  ;;  %v816_v10 = vmax.f32 %v796_v59, 0.0 }
 0x1f3   : > { %v791_v9 = vadd.f32 %v1440_v30, %v790_v8  ;;  %v814_v15 = vmax.f32 %v788_v62, 0.0  ;;  %v1787_v30 = vld [vmem:[%s2162_s7 + $0x38] sm:$0xff]  }
 0x1f4   : > { %v817_v12 = vmax.f32 %v799_v7, 0.0  ;;  %1722 = vmatprep.subr.bf16.mxu1 %v1787_v30 }
 0x1f5   : > { %v815_v21 = vmax.f32 %v791_v9, 0.0  ;;  %1723 = vmatpush3.bf16.msra.mxu1 %v1787_v30 }
 0x1f6   : > { %v825_v22 = vpack.c.bf16 %v817_v12, %v816_v10 }
 0x1f7   : > { %v824_v23 = vpack.c.bf16 %v815_v21, %v814_v15 }
 0x1f9   : > { %1704 = vmatprep.mubr.bf16.mxu0 %v824_v23 }
 0x1fa   : > { %1705 = vmatmul.mubr.bf16.gmra.mrb[28].mxu0 %v825_v22 }
 0x2b5   : > { %v1694_v27 = vpop.f32.mrb[16].mxu0 }
 0x2b6   : > { %v940_v28 = vadd.f32 %v1694_v27, %v2062_v26  ;;  %v931_v29 = vpop.f32.mrb[17].mxu0 }
 0x2b7   : > { %v932_v31 = vadd.f32 %v2062_v26, %v931_v29  ;;  %v1695_v32 = vpop.f32.mrb[18].mxu0 }
 0x2b8   : > { %v996_v34 = vmax.f32 %v940_v28, 0.0  ;;  %v943_v37 = vadd.f32 %v1695_v32, %v2062_v26  ;;  %v934_v43 = vpop.f32.mrb[19].mxu0 }
 0x2b9   : > { %v994_v44 = vmax.f32 %v932_v31, 0.0  ;;  %v935_v45 = vadd.f32 %v2062_v26, %v934_v43 }
 0x2ba   : > { %v1012_v46 = vadd.f32 %v996_v34, %v612_v42  ;;  %v997_v48 = vmax.f32 %v943_v37, 0.0 }
 0x2bb   : > { %v1010_v51 = vadd.f32 %v994_v44, %v610_v40  ;;  %v995_v57 = vmax.f32 %v935_v45, 0.0 }
 0x2bc   : > { %v1013_v58 = vadd.f32 %v997_v48, %v613_v39  ;;  %v1028_v62 = vmax.f32 %v1012_v46, 0.0 }
 0x2bd   : > { %v1011_v59 = vadd.f32 %v995_v57, %v611_v41  ;;  %v1698_v60 = vpop.f32.mrb[20].mxu0  ;;  %v1026_v9 = vmax.f32 %v1010_v51, 0.0 }
 0x2be   : > { %v1029_v1 = vmax.f32 %v1013_v58, 0.0  ;;  %v956_v7 = vadd.f32 %v1698_v60, %v2062_v26  ;;  %v947_v8 = vpop.f32.mrb[21].mxu0 }
 0x2bf   : > { %v1027_v33 = vmax.f32 %v1011_v59, 0.0  ;;  %v948_v35 = vadd.f32 %v2062_v26, %v947_v8  ;;  %v1699_v36 = vpop.f32.mrb[22].mxu0 }
 0x2c0   : > { %v1043_v38 = vpack.c.bf16 %v1029_v1, %v1028_v62  ;;  %v1000_v39 = vmax.f32 %v956_v7, 0.0  ;;  %v959_v40 = vadd.f32 %v1699_v36, %v2062_v26  ;;  %v950_v41 = vpop.f32.mrb[23].mxu0 }
 0x2c1   : > { %v998_v42 = vmax.f32 %v948_v35, 0.0  ;;  %v951_v10 = vadd.f32 %v2062_v26, %v950_v41  ;;  %v1042_v12 = vpack.c.bf16 %v1027_v33, %v1026_v9 }
 0x2c2   : > { %1541 = vst [vmem:[%s2082_s24 + $0x8] sm:$0xff] %v1043_v38   ;;  %v1016_v15 = vadd.f32 %v1000_v39, %v616_v56  ;;  %v1001_v21 = vmax.f32 %v959_v40, 0.0 }
 0x2c3   : > { %v1014_v22 = vadd.f32 %v998_v42, %v614_v54  ;;  %v999_v23 = vmax.f32 %v951_v10, 0.0  ;;  %1505 = vst [vmem:[%s2082_s24] sm:$0xff] %v1042_v12   ;;  %1724 = vmatprep.mubr.bf16.mxu1 %v1042_v12 }
 0x2c4   : > { %v1017_v24 = vadd.f32 %v1001_v21, %v617_v53  ;;  %1725 = vmatmul.mubr.bf16.vlgmr.msra.gmra.mrb[16].mxu1 %v1043_v38  ;;  %v1032_v27 = vmax.f32 %v1016_v15, 0.0 }
 0x2c5   : > { %v1015_v25 = vadd.f32 %v999_v23, %v615_v55  ;;  %v1702_v30 = vpop.f32.mrb[24].mxu0  ;;  %v1030_v29 = vmax.f32 %v1014_v22, 0.0 }
 0x2c6   : > { %v1033_v28 = vmax.f32 %v1017_v24, 0.0  ;;  %v972_v49 = vadd.f32 %v1702_v30, %v2062_v26  ;;  %v963_v56 = vpop.f32.mrb[25].mxu0 }
 0x2c7   : > { %v1031_v47 = vmax.f32 %v1015_v25, 0.0  ;;  %v964_v54 = vadd.f32 %v2062_v26, %v963_v56  ;;  %v1703_v31 = vpop.f32.mrb[26].mxu0 }
 0x2c8   : > { %v1004_v32 = vmax.f32 %v972_v49, 0.0  ;;  %v975_v50 = vadd.f32 %v1703_v31, %v2062_v26  ;;  %v966_v53 = vpop.f32.mrb[27].mxu0  ;;  %v1045_v34 = vpack.c.bf16 %v1033_v28, %v1032_v27 }
 0x2c9   : > { %v1002_v52 = vmax.f32 %v964_v54, 0.0  ;;  %v967_v55 = vadd.f32 %v2062_v26, %v966_v53  ;;  %v1044_v37 = vpack.c.bf16 %v1031_v47, %v1030_v29 }
 0x2ca   : > { %v1020_v43 = vadd.f32 %v1004_v32, %v620_v6  ;;  %v1005_v44 = vmax.f32 %v975_v50, 0.0  ;;  %1543 = vst [vmem:[%s2082_s24 + $0x18] sm:$0xff] %v1045_v34  }
 0x2cb   : > { %v1018_v45 = vadd.f32 %v1002_v52, %v618_v4  ;;  %v1003_v46 = vmax.f32 %v967_v55, 0.0  ;;  %1542 = vst [vmem:[%s2082_s24 + $0x10] sm:$0xff] %v1044_v37   ;;  %1728 = vmatprep.mubr.bf16.mxu1 %v1044_v37 }
 0x2cc   : > { %v1021_v48 = vadd.f32 %v1005_v44, %v621_v3  ;;  %1729 = vmatmul.mubr.bf16.gmra.mrb[20].mxu1 %v1045_v34  ;;  %v1036_v58 = vmax.f32 %v1020_v43, 0.0 }
 0x2cd   : > { %v1019_v51 = vadd.f32 %v1003_v46, %v619_v5  ;;  %v1706_v57 = vpop.f32.mrb[28].mxu0  ;;  %v1034_v60 = vmax.f32 %v1018_v45, 0.0 }
 0x2ce   : > { %v1037_v59 = vmax.f32 %v1021_v48, 0.0  ;;  %v988_v63 = vadd.f32 %v1706_v57, %v2062_v26  ;;  %v979_v6 = vpop.f32.mrb[29].mxu0 }
 0x2cf   : > { %v1035_v61 = vmax.f32 %v1019_v51, 0.0  ;;  %v980_v4 = vadd.f32 %v2062_v26, %v979_v6  ;;  %v1707_v62 = vpop.f32.mrb[30].mxu0 }
 0x2d0   : > { %v1008_v1 = vmax.f32 %v988_v63, 0.0  ;;  %v991_v0 = vadd.f32 %v1707_v62, %v2062_v26  ;;  %v982_v3 = vpop.f32.mrb[31].mxu0  ;;  %v1047_v7 = vpack.c.bf16 %v1037_v59, %v1036_v58 }
 0x2d1   : > { %v1006_v2 = vmax.f32 %v980_v4, 0.0  ;;  %v983_v5 = vadd.f32 %v2062_v26, %v982_v3  ;;  %v1046_v8 = vpack.c.bf16 %v1035_v61, %v1034_v60 }
 0x2d2   : > { %v1024_v9 = vadd.f32 %v1008_v1, %v624_v20  ;;  %v1009_v33 = vmax.f32 %v991_v0, 0.0  ;;  %1545 = vst [vmem:[%s2082_s24 + $0x28] sm:$0xff] %v1047_v7  }
 0x2d3   : > { %v1022_v35 = vadd.f32 %v1006_v2, %v622_v18  ;;  %v1007_v36 = vmax.f32 %v983_v5, 0.0  ;;  %1544 = vst [vmem:[%s2082_s24 + $0x20] sm:$0xff] %v1046_v8   ;;  %1732 = vmatprep.mubr.bf16.mxu1 %v1046_v8 }
 0x2d4   : > { %v1025_v38 = vadd.f32 %v1009_v33, %v625_v17  ;;  %1733 = vmatmul.mubr.bf16.gmra.mrb[24].mxu1 %v1047_v7  ;;  %v1040_v13 = vmax.f32 %v1024_v9, 0.0 }
 0x2d5   : > { %v1023_v26 = vadd.f32 %v1007_v36, %v623_v19  ;;  %v1038_v39 = vmax.f32 %v1022_v35, 0.0 }
 0x2d6   : > { %v1041_v20 = vmax.f32 %v1025_v38, 0.0 }
 0x2d7   : > { %v1039_v40 = vmax.f32 %v1023_v26, 0.0 }
 0x2d8   : > { %v1049_v41 = vpack.c.bf16 %v1041_v20, %v1040_v13 }
 0x2d9   : > { %v1048_v42 = vpack.c.bf16 %v1039_v40, %v1038_v39 }
 0x2da   : > { %1547 = vst [vmem:[%s2082_s24 + $0x38] sm:$0xff] %v1049_v41  }
 0x2db   : > { %1546 = vst [vmem:[%s2082_s24 + $0x30] sm:$0xff] %v1048_v42   ;;  %1736 = vmatprep.mubr.bf16.mxu1 %v1048_v42 }
 0x2dc   : > { %1737 = vmatmul.mubr.bf16.gmra.mrb[28].mxu1 %v1049_v41 }
 0x397   : > { %v1726_v14 = vpop.f32.mrb[16].mxu1 }
 0x398   : > { %v1236_v17 = vadd.f32 %v1726_v14, %v1474_v11  ;;  %v1227_v18 = vpop.f32.mrb[17].mxu1 }
 0x399   : > { %v1228_v16 = vadd.f32 %v1474_v11, %v1227_v18  ;;  %v1727_v19 = vpop.f32.mrb[18].mxu1 }
 0x39a   : > { %v1292_v10 = vmax.f32 %v1236_v17, 0.0  ;;  %v1239_v12 = vadd.f32 %v1727_v19, %v1474_v11  ;;  %v1230_v15 = vpop.f32.mrb[19].mxu1 }
 0x39b   : > { %v1290_v21 = vmax.f32 %v1228_v16, 0.0  ;;  %v1231_v22 = vadd.f32 %v1474_v11, %v1230_v15 }
 0x39c   : > { %1308 = vst [vmem:[%s2134_s30 + $0x10] sm:$0xff] %v1292_v10  ;;  %v1293_v23 = vmax.f32 %v1239_v12, 0.0 }
 0x39d   : > { %1306 = vst [vmem:[%s2134_s30] sm:$0xff] %v1290_v21  ;;  %v1291_v24 = vmax.f32 %v1231_v22, 0.0 }
 0x39e   : > { %1309 = vst [vmem:[%s2134_s30 + $0x18] sm:$0xff] %v1293_v23 }
 0x39f   : > { %1307 = vst [vmem:[%s2134_s30 + $0x8] sm:$0xff] %v1291_v24  ;;  %v1730_v25 = vpop.f32.mrb[20].mxu1 }
 0x3a0   : > { %v1252_v30 = vadd.f32 %v1730_v25, %v1474_v11  ;;  %v1243_v27 = vpop.f32.mrb[21].mxu1 }
 0x3a1   : > { %v1244_v28 = vadd.f32 %v1474_v11, %v1243_v27  ;;  %v1731_v49 = vpop.f32.mrb[22].mxu1 }
 0x3a2   : > { %v1296_v56 = vmax.f32 %v1252_v30, 0.0  ;;  %v1255_v29 = vadd.f32 %v1731_v49, %v1474_v11  ;;  %v1246_v47 = vpop.f32.mrb[23].mxu1 }
 0x3a3   : > { %v1294_v54 = vmax.f32 %v1244_v28, 0.0  ;;  %v1247_v31 = vadd.f32 %v1474_v11, %v1246_v47 }
 0x3a4   : > { %1312 = vst [vmem:[%s2134_s30 + $0x30] sm:$0xff] %v1296_v56  ;;  %v1297_v32 = vmax.f32 %v1255_v29, 0.0 }
 0x3a5   : > { %1310 = vst [vmem:[%s2134_s30 + $0x20] sm:$0xff] %v1294_v54  ;;  %v1295_v50 = vmax.f32 %v1247_v31, 0.0 }
 0x3a6   : > { %1313 = vst [vmem:[%s2134_s30 + $0x38] sm:$0xff] %v1297_v32 }
 0x3a7   : > { %1311 = vst [vmem:[%s2134_s30 + $0x28] sm:$0xff] %v1295_v50  ;;  %v1734_v53 = vpop.f32.mrb[24].mxu1 }
 0x3a8   : > { %v1268_v34 = vadd.f32 %v1734_v53, %v1474_v11  ;;  %v1259_v52 = vpop.f32.mrb[25].mxu1 }
 0x3a9   : > { %v1260_v55 = vadd.f32 %v1474_v11, %v1259_v52  ;;  %v1735_v37 = vpop.f32.mrb[26].mxu1 }
 0x3aa   : > { %v1300_v43 = vmax.f32 %v1268_v34, 0.0  ;;  %v1271_v44 = vadd.f32 %v1735_v37, %v1474_v11  ;;  %v1262_v45 = vpop.f32.mrb[27].mxu1 }
 0x3ab   : > { %v1298_v46 = vmax.f32 %v1260_v55, 0.0  ;;  %v1263_v48 = vadd.f32 %v1474_v11, %v1262_v45 }
 0x3ac   : > { %1316 = vst [vmem:[%s2134_s30 + $0x50] sm:$0xff] %v1300_v43  ;;  %v1301_v51 = vmax.f32 %v1271_v44, 0.0 }
 0x3ad   : > { %1314 = vst [vmem:[%s2134_s30 + $0x40] sm:$0xff] %v1298_v46  ;;  %v1299_v57 = vmax.f32 %v1263_v48, 0.0 }
 0x3ae   : > { %1317 = vst [vmem:[%s2134_s30 + $0x58] sm:$0xff] %v1301_v51 }
 0x3af   : > { %1315 = vst [vmem:[%s2134_s30 + $0x48] sm:$0xff] %v1299_v57  ;;  %v1738_v58 = vpop.f32.mrb[28].mxu1 }
 0x3b0   : > { %v1284_v59 = vadd.f32 %v1738_v58, %v1474_v11  ;;  %v1275_v63 = vpop.f32.mrb[29].mxu1 }
 0x3b1   : > { %v1276_v6 = vadd.f32 %v1474_v11, %v1275_v63  ;;  %v1739_v60 = vpop.f32.mrb[30].mxu1 }
 0x3b2   : > { %v1304_v61 = vmax.f32 %v1284_v59, 0.0  ;;  %v1287_v4 = vadd.f32 %v1739_v60, %v1474_v11  ;;  %v1278_v62 = vpop.f32.mrb[31].mxu1 }
 0x3b3   : > { %v1302_v1 = vmax.f32 %v1276_v6, 0.0  ;;  %v1279_v0 = vadd.f32 %v1474_v11, %v1278_v62 }
 0x3b4   : > { %1320 = vst [vmem:[%s2134_s30 + $0x70] sm:$0xff] %v1304_v61  ;;  %v1305_v3 = vmax.f32 %v1287_v4, 0.0 }
 0x3b5   : > { %1318 = vst [vmem:[%s2134_s30 + $0x60] sm:$0xff] %v1302_v1  ;;  %v1303_v7 = vmax.f32 %v1279_v0, 0.0 }
 0x3b6   : > { %1321 = vst [vmem:[%s2134_s30 + $0x78] sm:$0xff] %v1305_v3 }
 0x3b7   : > { %1319 = vst [vmem:[%s2134_s30 + $0x68] sm:$0xff] %v1303_v7 }
 0x3b8 PF: > { %s21_s13 = sadd.s32 1, %s1794_s13  }
 0x3b9   : > { %p18_p4 = scmp.ge.s32.totalorder %s21_s13, 4  }
 0x3bb   :  { %20 = sbr.rel (!%p18_p4) target bundleno = 1 (0x1), region = 98 }

// kernel: feature_gen_block.3
= control target key start
LH: loop header
LB: loop body
LE: loop exit
PB: predicated region body
PF: predicated region fallthrough
CT: control target
= control target key end

     0   :  { %s3202_s0 = inlined_call_operand.vmem [shape: bf16[256,128], index: 0, kind: input, shape index: {}]   ;;  %s3203_s1 = inlined_call_operand.vmem [shape: bf16[256,256], index: 1, kind: input, shape index: {}]   ;;  %s3204_s2 = inlined_call_operand.vmem [shape: bf16[256,128], index: 2, kind: input, shape index: {}]   ;;  %s3205_s3 = inlined_call_operand.vmem [shape: bf16[128,128], index: 3, kind: input, shape index: {}]   ;;  %s3206_s4 = inlined_call_operand.vmem [shape: f32[1,128], index: 4, kind: input, shape index: {}]   ;;  %s3207_s5 = inlined_call_operand.vmem [shape: bf16[128,128], index: 5, kind: input, shape index: {}]   ;;  %s3208_s6 = inlined_call_operand.vmem [shape: f32[1,128], index: 6, kind: input, shape index: {}]   ;;  %s3209_s7 = inlined_call_operand.vmem [shape: bf16[128,128], index: 7, kind: input, shape index: {}]   ;;  %s3210_s8 = inlined_call_operand.vmem [shape: f32[1,128], index: 8, kind: input, shape index: {}]   ;;  %s3211_s9 = inlined_call_operand.vmem [shape: bf16[128,128], index: 9, kind: input, shape index: {}]   ;;  %s3212_s10 = inlined_call_operand.vmem [shape: bf16[128,128], index: 10, kind: input, shape index: {}]   ;;  %s3213_s11 = inlined_call_operand.vmem [shape: f32[1,128], index: 11, kind: input, shape index: {}]   ;;  %s3214_s12 = inlined_call_operand.vmem [shape: f32[256,128], index: 12, kind: output, shape index: {}]  }
   0x1   :  { %3218 = sst [smem:[#allocation7_spill]] %s3203_s1 }
   0x2   :  { %3219 = sst [smem:[#allocation8_spill]] %s3210_s8 }
   0x3   :  { %3220 = sst [smem:[#allocation9_spill]] %s3213_s11 }
   0x4   :  { %s2717_s21 = smov 0   ;;  %s2719_s22 = smov 0  }
   0x5   :  { %s2721_s23 = smov 0   ;;  %s2723_s24 = smov 0  }
   0x6   :  { %s2725_s25 = smov 0   ;;  %s2727_s26 = smov 0  }
   0x7   :  { %s2729_s27 = smov 0  }
   0x8 LB: > { %3221 = sst [smem:[#allocation4_spill]] %s2645_s26  ;;  %s31_s28 = sadd.s32 1, %s2641_s25  ;;  %s2649_s27 = sphi %s2729_s27, %s22_s27   ;;  %s2645_s26 = sphi %s2727_s26, %s3229_s26   ;;  %s2641_s25 = sphi %s2725_s25, %s3233_s25   ;;  %s2637_s24 = sphi %s2723_s24, %s3227_s24   ;;  %s2633_s23 = sphi %s2721_s23, %s3232_s23   ;;  %s2629_s22 = sphi %s2719_s22, %s3231_s22   ;;  %s2625_s21 = sphi %s2717_s21, %s3230_s21  }
   0x9   : > { %p32_p0 = scmp.ge.s32.totalorder %s31_s28, 2  ;;  %s34_s29 = sadd.s32 1, %s2645_s26 }
   0xa   : > { %p76_p1 = scmp.ne.s32.totalorder %s2629_s22, %s2625_s21  ;;  %p77_p2 = scmp.eq.s32.totalorder %s2649_s27, 0 }
   0xb   : > { %s3235_s28 = smov (%p32_p0, %s31_s28), 0  ;;  %s3237_s29 = smov (!%p32_p0, %s34_s29), %s2645_s26 }
   0xc   : > { %3222 = sst [smem:[#allocation5_spill]] %s3235_s28  ;;  %p78_p3 = por %p77_p2, %p76_p1 }
   0xd   : > { %p36_p4 = scmp.ge.s32.totalorder %s3237_s29, 2  ;;  %s65_s30 = ssub.s32 %s2641_s25, %s3235_s28 }
   0xe   : > { %s69_s15 = sadd.s32 1, %s2629_s22  ;;  %p2052_p6 = scmp.ge.s32.totalorder %s2649_s27, 4 }
   0xf   : > { %s3239_s29 = smov (%p36_p4, %s3237_s29), 0 }
  0x10   : > { %3223 = sst [smem:[#allocation6_spill]] %s3239_s29  ;;  %s64_s13 = ssub.s32 %s2645_s26, %s3239_s29 }
  0x11   : > { %s66_s14 = sor.u32 %s65_s30, %s64_s13  ;;  %370 = sbr.rel (%p2052_p6) target bundleno = 44 (0x2c), region = 52 }
  0x12   : > { %p67_p5 = scmp.eq.s32.totalorder %s66_s14, 0 }
  0x14   : > { %s2768_s16 = scalar_select %p67_p5, %s2629_s22, %s69_s15  }
  0x18   : > { %382 = sbr.rel (!%p78_p3) target bundleno = 44 (0x2c), region = 60  ;;  %s384_s17 = sand.u32 (%p78_p3), 1, %s2629_s22  }
  0x19   : > { %s2137_s18 = sshll.u32 (%p78_p3), %s2645_s26, 5  ;;  %s2053_s19 = sshll.u32 (%p78_p3), %s384_s17, 6 }
  0x1a   : > { %s389_s20 = sadd.s32 (%p78_p3), %s2641_s25, %s2137_s18  ;;  %s3224_s1 = sld [smem:[#allocation7_spill]] (%p78_p3) }
  0x1b   : > { %s2056_s28 = sshll.u32 (%p78_p3), %s389_s20, 2  ;;  %s386_s13 = scalar_lea.vmem (%p78_p3), [#allocation3], %s2053_s19 }
  0x20   : > { %s2777_s30 = scalar_lea.vmem %s3224_s1, %s2056_s28 }
  0x21   : > { %v407_v0 = vld [vmem:[%s2777_s30] sm:$0xf]  ;;  %v409_v1 = vld [vmem:[%s2777_s30 + $0x8] sm:$0xf]  ;;  %v411_v2 = vld [vmem:[%s2777_s30 + $0x10] sm:$0xf] }
  0x22   : > { %408 = vst [vmem:[%s386_s13] sm:$0xf] %v407_v0  ;;  %410 = vst [vmem:[%s386_s13 + $0x4] sm:$0xf] %v409_v1  ;;  %v413_v3 = vld [vmem:[%s2777_s30 + $0x18] sm:$0xf] }
  0x23   : > { %412 = vst [vmem:[%s386_s13 + $0x8] sm:$0xf] %v411_v2  ;;  %v415_v4 = vld [vmem:[%s2777_s30 + $0x20] sm:$0xf]  ;;  %v417_v5 = vld [vmem:[%s2777_s30 + $0x28] sm:$0xf] }
  0x24   : > { %414 = vst [vmem:[%s386_s13 + $0xc] sm:$0xf] %v413_v3  ;;  %416 = vst [vmem:[%s386_s13 + $0x10] sm:$0xf] %v415_v4  ;;  %v419_v6 = vld [vmem:[%s2777_s30 + $0x30] sm:$0xf] }
  0x25   : > { %418 = vst [vmem:[%s386_s13 + $0x14] sm:$0xf] %v417_v5  ;;  %v421_v7 = vld [vmem:[%s2777_s30 + $0x38] sm:$0xf]  ;;  %v423_v8 = vld [vmem:[%s2777_s30 + $0x40] sm:$0xf] }
  0x26   : > { %420 = vst [vmem:[%s386_s13 + $0x18] sm:$0xf] %v419_v6  ;;  %422 = vst [vmem:[%s386_s13 + $0x1c] sm:$0xf] %v421_v7  ;;  %v425_v9 = vld [vmem:[%s2777_s30 + $0x48] sm:$0xf] }
  0x27   : > { %424 = vst [vmem:[%s386_s13 + $0x20] sm:$0xf] %v423_v8  ;;  %v427_v10 = vld [vmem:[%s2777_s30 + $0x50] sm:$0xf]  ;;  %v429_v11 = vld [vmem:[%s2777_s30 + $0x58] sm:$0xf] }
  0x28   : > { %426 = vst [vmem:[%s386_s13 + $0x24] sm:$0xf] %v425_v9  ;;  %428 = vst [vmem:[%s386_s13 + $0x28] sm:$0xf] %v427_v10  ;;  %v431_v12 = vld [vmem:[%s2777_s30 + $0x60] sm:$0xf] }
  0x29   : > { %430 = vst [vmem:[%s386_s13 + $0x2c] sm:$0xf] %v429_v11  ;;  %v433_v13 = vld [vmem:[%s2777_s30 + $0x68] sm:$0xf]  ;;  %v435_v14 = vld [vmem:[%s2777_s30 + $0x70] sm:$0xf] }
  0x2a   : > { %432 = vst [vmem:[%s386_s13 + $0x30] sm:$0xf] %v431_v12  ;;  %434 = vst [vmem:[%s386_s13 + $0x34] sm:$0xf] %v433_v13  ;;  %v437_v15 = vld [vmem:[%s2777_s30 + $0x78] sm:$0xf] }
  0x2b   : > { %436 = vst [vmem:[%s386_s13 + $0x38] sm:$0xf] %v435_v14  ;;  %438 = vst [vmem:[%s386_s13 + $0x3c] sm:$0xf] %v437_v15 }
  0x2c PF: > { %p2057_p7 = scmp.ge.s32.totalorder %s2649_s27, 1  ;;  %p501_p8 = scmp.lt.s32.totalorder %s2649_s27, 5 }
  0x2e   : > { %p502_p9 = pnand %p2057_p7, %p501_p8 }
  0x2f   : > { %s508_s8 = sand.u32 (!%p502_p9), 1, %s2625_s21   ;;  %s2059_s11 = sshll.u32 (!%p502_p9), %s2637_s24, 4 }
  0x30   : > { %505 = sbr.rel (%p502_p9) target bundleno = 1226 (0x4ca), region = 105  ;;  %s2058_s28 = sshll.u32 (!%p502_p9), %s508_s8, 6 }
  0x31   : > { %p560_p10 = scmp.lt.s32.totalorder (!%p502_p9), %s2059_s11, 31  ;;  %s2061_s14 = sshll.u32 (!%p502_p9), %s2633_s23, 4 }
  0x32   : > { %p567_p11 = scmp.lt.s32.totalorder (!%p502_p9), %s2061_s14, 31  ;;  %s2815_s26 = scalar_lea.vmem (!%p502_p9), [#allocation3], %s2058_s28 }
  0x33   : > { %p2065_p12 = scmp.ne.s32.totalorder (!%p502_p9), %s2633_s23, 0 }
  0x37   : > { %s3241_s11 = smov (!%p560_p10, %s2059_s11), 31  ;;  %s3243_s14 = smov (!%p567_p11, %s2061_s14), 31 }
  0x38   : > { %s2060_s15 = sshll.u32 %s3241_s11, 2  ;;  %s2064_s17 = sshll.u32 %s3241_s11, 3  ;;  %v2651_v16 = vmov (!%p2065_p12), 0.0  }
  0x39   : > { %s2803_s20 = scalar_lea.vmem %s3202_s0, %s2060_s15  ;;  %s2808_s1 = scalar_lea.vmem %s3214_s12, %s2064_s17  ;;  %583 = vst [vmem:[#allocation2] sm:$0xff] (!%p2065_p12), %v2651_v16  ;;  %584 = vst [vmem:[#allocation2 + $0x8] sm:$0xff] (!%p2065_p12), %v2651_v16 }
  0x3a   : > { %s2062_s21 = sshll.u32 %s3243_s14, 2  ;;  %582 = sbr.rel (%p2065_p12) target bundleno = 65 (0x41), region = 113  ;;  %585 = vst [vmem:[#allocation2 + $0x10] sm:$0xff] (!%p2065_p12), %v2651_v16  ;;  %586 = vst [vmem:[#allocation2 + $0x18] sm:$0xff] (!%p2065_p12), %v2651_v16 }
  0x3b   : > { %s2813_s29 = scalar_lea.vmem %s3204_s2, %s2062_s21  ;;  %587 = vst [vmem:[#allocation2 + $0x20] sm:$0xff] (!%p2065_p12), %v2651_v16  ;;  %588 = vst [vmem:[#allocation2 + $0x28] sm:$0xff] (!%p2065_p12), %v2651_v16 }
  0x3c   : > { %589 = vst [vmem:[#allocation2 + $0x30] sm:$0xff] (!%p2065_p12), %v2651_v16  ;;  %590 = vst [vmem:[#allocation2 + $0x38] sm:$0xff] (!%p2065_p12), %v2651_v16 }
  0x3d   : > { %591 = vst [vmem:[#allocation2 + $0x40] sm:$0xff] (!%p2065_p12), %v2651_v16  ;;  %592 = vst [vmem:[#allocation2 + $0x48] sm:$0xff] (!%p2065_p12), %v2651_v16 }
  0x3e   : > { %593 = vst [vmem:[#allocation2 + $0x50] sm:$0xff] (!%p2065_p12), %v2651_v16  ;;  %594 = vst [vmem:[#allocation2 + $0x58] sm:$0xff] (!%p2065_p12), %v2651_v16 }
  0x3f   : > { %595 = vst [vmem:[#allocation2 + $0x60] sm:$0xff] (!%p2065_p12), %v2651_v16  ;;  %596 = vst [vmem:[#allocation2 + $0x68] sm:$0xff] (!%p2065_p12), %v2651_v16 }
  0x40   : > { %597 = vst [vmem:[#allocation2 + $0x70] sm:$0xff] (!%p2065_p12), %v2651_v16  ;;  %598 = vst [vmem:[#allocation2 + $0x78] sm:$0xff] (!%p2065_p12), %v2651_v16 }
  0x41 PF: > { %v2531_v17 = vld [vmem:[%s2813_s29] sm:$0xff]   ;;  %v2532_v18 = vld [vmem:[%s2813_s29 + $0x8] sm:$0xff]   ;;  %v2533_v19 = vld [vmem:[%s2813_s29 + $0x10] sm:$0xff]   ;;  %p2082_p13 = scmp.ne.s32.totalorder %s2633_s23, 1 }
  0x42   : > { %2234 = vmatprep.subr.bf16.mxu0 %v2531_v17  ;;  %2426 = vmatprep.subr.bf16.mxu1 %v2531_v17  ;;  %v2534_v20 = vld [vmem:[%s2813_s29 + $0x18] sm:$0xff]   ;;  %v2539_v21 = vld [vmem:[%s2815_s26] sm:$0xff]   ;;  %v2536_v24 = vld [vmem:[%s2813_s29 + $0x28] sm:$0xff]   ;;  %s3225_s23 = sld [smem:[#allocation8_spill]] (!%p2082_p13)  ;;  %s3226_s30 = sld [smem:[#allocation9_spill]] (!%p2082_p13) }
  0x43   : > { %2235 = vmatpush3.bf16.msra.mxu0 %v2531_v17  ;;  %2434 = vmatpush3.bf16.msra.mxu1 %v2531_v17  ;;  %v2540_v22 = vld [vmem:[%s2815_s26 + $0x20] sm:$0xff]   ;;  %v2537_v25 = vld [vmem:[%s2813_s29 + $0x30] sm:$0xff]   ;;  %v2538_v26 = vld [vmem:[%s2813_s29 + $0x38] sm:$0xff]  }
  0x44   : > { %2236 = vmatprep.subr.bf16.mxu0 %v2532_v18  ;;  %2427 = vmatprep.subr.bf16.mxu1 %v2532_v18  ;;  %v2535_v23 = vld [vmem:[%s2813_s29 + $0x20] sm:$0xff]   ;;  %v2541_v27 = vld [vmem:[%s2815_s26 + $0x8] sm:$0xff]   ;;  %v2543_v29 = vld [vmem:[%s2815_s26 + $0x10] sm:$0xff]  }
  0x45   : > { %2250 = vmatprep.mubr.bf16.mxu0 %v2539_v21  ;;  %2258 = vmatprep.mubr.bf16.mxu1 %v2540_v22  ;;  %v2542_v28 = vld [vmem:[%s2815_s26 + $0x28] sm:$0xff]   ;;  %v2544_v30 = vld [vmem:[%s2815_s26 + $0x30] sm:$0xff]   ;;  %v2545_v31 = vld [vmem:[%s2815_s26 + $0x18] sm:$0xff]  }
  0x46   : > { %v2546_v32 = vld [vmem:[%s2815_s26 + $0x38] sm:$0xff]   ;;  %v601_v33 = vld [vmem:[#allocation2 + $0x10] sm:$0xff]  ;;  %v599_v35 = vld [vmem:[#allocation2] sm:$0xff] }
  0x47   : > { %2237 = vmatpush3.bf16.msra.mxu0 %v2532_v18  ;;  %2435 = vmatpush3.bf16.msra.mxu1 %v2532_v18  ;;  %v609_v34 = vld [vmem:[#allocation2 + $0x50] sm:$0xff]  ;;  %v607_v36 = vld [vmem:[#allocation2 + $0x40] sm:$0xff]  ;;  %v602_v39 = vld [vmem:[#allocation2 + $0x18] sm:$0xff] }
  0x48   : > { %2238 = vmatprep.subr.bf16.mxu0 %v2533_v19  ;;  %2428 = vmatprep.subr.bf16.mxu1 %v2533_v19  ;;  %v610_v40 = vld [vmem:[#allocation2 + $0x58] sm:$0xff]  ;;  %v600_v45 = vld [vmem:[#allocation2 + $0x8] sm:$0xff]  ;;  %v605_v57 = vld [vmem:[#allocation2 + $0x30] sm:$0xff] }
  0x49   : > { %v608_v46 = vld [vmem:[#allocation2 + $0x48] sm:$0xff]  ;;  %v613_v58 = vld [vmem:[#allocation2 + $0x70] sm:$0xff]  ;;  %v603_v59 = vld [vmem:[#allocation2 + $0x20] sm:$0xff] }
  0x4a   : > { %v611_v60 = vld [vmem:[#allocation2 + $0x60] sm:$0xff]  ;;  %v606_v63 = vld [vmem:[#allocation2 + $0x38] sm:$0xff]  ;;  %v604_v5 = vld [vmem:[#allocation2 + $0x28] sm:$0xff] }
  0x4b   : > { %2239 = vmatpush3.bf16.msra.mxu0 %v2533_v19  ;;  %2436 = vmatpush3.bf16.msra.mxu1 %v2533_v19  ;;  %v614_v0 = vld [vmem:[#allocation2 + $0x78] sm:$0xff]  ;;  %v612_v6 = vld [vmem:[#allocation2 + $0x68] sm:$0xff]  ;;  %v2547_v17 = vld [vmem:[%s3205_s3] sm:$0xff] (!%p2082_p13)  }
  0x4c   : > { %2240 = vmatprep.subr.bf16.mxu0 %v2534_v20  ;;  %2429 = vmatprep.subr.bf16.mxu1 %v2534_v20  ;;  %v2548_v18 = vld [vmem:[%s3205_s3 + $0x8] sm:$0xff] (!%p2082_p13)   ;;  %v2549_v19 = vld [vmem:[%s3205_s3 + $0x10] sm:$0xff] (!%p2082_p13)   ;;  %v2555_v21 = vld [vmem:[%s2803_s20] sm:$0xff] (!%p2082_p13)  }
  0x4d   : > { %v2551_v22 = vld [vmem:[%s3205_s3 + $0x20] sm:$0xff] (!%p2082_p13)  }
  0x4f   : > { %2241 = vmatpush3.bf16.msra.mxu0 %v2534_v20  ;;  %2437 = vmatpush3.bf16.msra.mxu1 %v2534_v20  ;;  %v2550_v20 = vld [vmem:[%s3205_s3 + $0x18] sm:$0xff] (!%p2082_p13)  }
  0x50   : > { %2242 = vmatprep.subr.bf16.mxu0 %v2535_v23  ;;  %2430 = vmatprep.subr.bf16.mxu1 %v2535_v23 }
  0x53   : > { %2243 = vmatpush3.bf16.msra.mxu0 %v2535_v23  ;;  %2438 = vmatpush3.bf16.msra.mxu1 %v2535_v23  ;;  %v2552_v23 = vld [vmem:[%s3205_s3 + $0x28] sm:$0xff] (!%p2082_p13)  }
  0x54   : > { %2244 = vmatprep.subr.bf16.mxu0 %v2536_v24  ;;  %2431 = vmatprep.subr.bf16.mxu1 %v2536_v24 }
  0x57   : > { %2245 = vmatpush3.bf16.msra.mxu0 %v2536_v24  ;;  %2439 = vmatpush3.bf16.msra.mxu1 %v2536_v24  ;;  %v2563_v24 = vld [vmem:[%s3207_s5] sm:$0xff] (!%p2082_p13)  }
  0x58   : > { %2246 = vmatprep.subr.bf16.mxu0 %v2537_v25  ;;  %2432 = vmatprep.subr.bf16.mxu1 %v2537_v25 }
  0x5b   : > { %2247 = vmatpush3.bf16.msra.mxu0 %v2537_v25  ;;  %2440 = vmatpush3.bf16.msra.mxu1 %v2537_v25  ;;  %v2564_v25 = vld [vmem:[%s3207_s5 + $0x8] sm:$0xff] (!%p2082_p13)  }
  0x5c   : > { %2248 = vmatprep.subr.bf16.mxu0 %v2538_v26  ;;  %2433 = vmatprep.subr.bf16.mxu1 %v2538_v26 }
  0x5f   : > { %2249 = vmatpush3.bf16.msra.mxu0 %v2538_v26  ;;  %2441 = vmatpush3.bf16.msra.mxu1 %v2538_v26  ;;  %v2553_v26 = vld [vmem:[%s3205_s3 + $0x30] sm:$0xff] (!%p2082_p13)  }
  0x60   : > { %2266 = vmatprep.subr.bf16.mxu0 (!%p2082_p13), %v2547_v17  ;;  %2298 = vmatprep.subr.bf16.mxu1 (!%p2082_p13), %v2563_v24 }
  0x62   : > { %2251 = vmatmul.mubr.bf16.vlgmr.msra.gmra.mrb[0].mxu0 %v2541_v27  ;;  %2259 = vmatmul.mubr.bf16.vlgmr.msra.gmra.mrb[0].mxu1 %v2542_v28  ;;  %v2565_v27 = vld [vmem:[%s3207_s5 + $0x10] sm:$0xff] (!%p2082_p13)   ;;  %v2554_v28 = vld [vmem:[%s3205_s3 + $0x38] sm:$0xff] (!%p2082_p13)  }
  0x63   : > { %2254 = vmatprep.mubr.bf16.mxu0 %v2543_v29  ;;  %2262 = vmatprep.mubr.bf16.mxu1 %v2544_v30  ;;  %v2566_v29 = vld [vmem:[%s3207_s5 + $0x18] sm:$0xff] (!%p2082_p13)   ;;  %v2567_v30 = vld [vmem:[%s3207_s5 + $0x20] sm:$0xff] (!%p2082_p13)  }
  0x64   : > { %2267 = vmatpush3.bf16.msra.mxu0 (!%p2082_p13), %v2547_v17  ;;  %2299 = vmatpush3.bf16.msra.mxu1 (!%p2082_p13), %v2563_v24 }
  0x65   : > { %2268 = vmatprep.subr.bf16.mxu0 (!%p2082_p13), %v2548_v18  ;;  %2300 = vmatprep.subr.bf16.mxu1 (!%p2082_p13), %v2564_v25 }
  0x68   : > { %2269 = vmatpush3.bf16.msra.mxu0 (!%p2082_p13), %v2548_v18  ;;  %2301 = vmatpush3.bf16.msra.mxu1 (!%p2082_p13), %v2564_v25 }
  0x69   : > { %2270 = vmatprep.subr.bf16.mxu0 (!%p2082_p13), %v2549_v19  ;;  %2302 = vmatprep.subr.bf16.mxu1 (!%p2082_p13), %v2565_v27 }
  0x6a   : > { %2255 = vmatmul.mubr.bf16.gmra.mrb[4].mxu0 %v2545_v31  ;;  %2263 = vmatmul.mubr.bf16.gmra.mrb[4].mxu1 %v2546_v32  ;;  %v2556_v31 = vld [vmem:[%s2803_s20 + $0x8] sm:$0xff] (!%p2082_p13)   ;;  %v2557_v32 = vld [vmem:[%s2803_s20 + $0x10] sm:$0xff] (!%p2082_p13)  }
  0x6b   : > { %2282 = vmatprep.mubr.bf16.mxu0 (!%p2082_p13), %v2555_v21 }
  0x6c   : > { %2271 = vmatpush3.bf16.msra.mxu0 (!%p2082_p13), %v2549_v19  ;;  %2303 = vmatpush3.bf16.msra.mxu1 (!%p2082_p13), %v2565_v27 }
  0x6d   : > { %2272 = vmatprep.subr.bf16.mxu0 (!%p2082_p13), %v2550_v20  ;;  %2304 = vmatprep.subr.bf16.mxu1 (!%p2082_p13), %v2566_v29 }
  0x70   : > { %2273 = vmatpush3.bf16.msra.mxu0 (!%p2082_p13), %v2550_v20  ;;  %2305 = vmatpush3.bf16.msra.mxu1 (!%p2082_p13), %v2566_v29 }
  0x71   : > { %2274 = vmatprep.subr.bf16.mxu0 (!%p2082_p13), %v2551_v22  ;;  %2306 = vmatprep.subr.bf16.mxu1 (!%p2082_p13), %v2567_v30 }
  0x74   : > { %2275 = vmatpush3.bf16.msra.mxu0 (!%p2082_p13), %v2551_v22  ;;  %2307 = vmatpush3.bf16.msra.mxu1 (!%p2082_p13), %v2567_v30 }
  0x75   : > { %2276 = vmatprep.subr.bf16.mxu0 (!%p2082_p13), %v2552_v23 }
  0x78   : > { %2277 = vmatpush3.bf16.msra.mxu0 (!%p2082_p13), %v2552_v23 }
  0x79   : > { %2278 = vmatprep.subr.bf16.mxu0 (!%p2082_p13), %v2553_v26 }
  0x7c   : > { %2279 = vmatpush3.bf16.msra.mxu0 (!%p2082_p13), %v2553_v26 }
  0x7d   : > { %2280 = vmatprep.subr.bf16.mxu0 (!%p2082_p13), %v2554_v28 }
  0x80   : > { %2281 = vmatpush3.bf16.msra.mxu0 (!%p2082_p13), %v2554_v28 }
 0x135   : > { %v2252_v37 = vpop.f32.mrb[0].mxu0  ;;  %v2260_v38 = vpop.f32.mrb[0].mxu1 }
 0x136   : > { %v842_v41 = vadd.f32 %v2252_v37, %v601_v33  ;;  %v850_v42 = vadd.f32 %v2260_v38, %v609_v34  ;;  %v777_v43 = vpop.f32.mrb[1].mxu0  ;;  %v809_v44 = vpop.f32.mrb[1].mxu1  ;;  %v2568_v33 = vld [vmem:[%s3207_s5 + $0x28] sm:$0xff] (!%p2082_p13)   ;;  %v2558_v34 = vld [vmem:[%s2803_s20 + $0x18] sm:$0xff] (!%p2082_p13)   ;;  %v2561_v37 = vld [vmem:[%s2803_s20 + $0x30] sm:$0xff] (!%p2082_p13)  }
 0x137   : > { %v840_v47 = vadd.f32 %v777_v43, %v599_v35  ;;  %v848_v48 = vadd.f32 %v809_v44, %v607_v36  ;;  %v2253_v49 = vpop.f32.mrb[2].mxu0  ;;  %v2261_v50 = vpop.f32.mrb[2].mxu1  ;;  %2308 = vmatprep.subr.bf16.mxu1 (!%p2082_p13), %v2568_v33  ;;  %v2559_v35 = vld [vmem:[%s2803_s20 + $0x20] sm:$0xff] (!%p2082_p13)   ;;  %v2560_v36 = vld [vmem:[%s2803_s20 + $0x28] sm:$0xff] (!%p2082_p13)   ;;  %v2562_v38 = vld [vmem:[%s2803_s20 + $0x38] sm:$0xff] (!%p2082_p13)  }
 0x138   : > { %858 = vst [vmem:[#allocation2 + $0x10] sm:$0xff] %v842_v41  ;;  %866 = vst [vmem:[#allocation2 + $0x50] sm:$0xff] %v850_v42  ;;  %v843_v51 = vadd.f32 %v2253_v49, %v602_v39  ;;  %v851_v52 = vadd.f32 %v2261_v50, %v610_v40  ;;  %v780_v53 = vpop.f32.mrb[3].mxu0  ;;  %v812_v54 = vpop.f32.mrb[3].mxu1  ;;  %2283 = vmatmul.mubr.bf16.vlgmr.msra.gmra.mrb[0].mxu0 (!%p2082_p13), %v2556_v31  ;;  %2309 = vmatpush3.bf16.msra.mxu1 (!%p2082_p13), %v2568_v33  ;;  %v2569_v39 = vld [vmem:[%s3207_s5 + $0x30] sm:$0xff] (!%p2082_p13)   ;;  %v2570_v40 = vld [vmem:[%s3207_s5 + $0x38] sm:$0xff] (!%p2082_p13)  }
 0x139   : > { %856 = vst [vmem:[#allocation2] sm:$0xff] %v840_v47  ;;  %864 = vst [vmem:[#allocation2 + $0x40] sm:$0xff] %v848_v48  ;;  %v841_v55 = vadd.f32 %v780_v53, %v600_v45  ;;  %v849_v56 = vadd.f32 %v812_v54, %v608_v46  ;;  %2286 = vmatprep.mubr.bf16.mxu0 (!%p2082_p13), %v2557_v32  ;;  %2310 = vmatprep.subr.bf16.mxu1 (!%p2082_p13), %v2569_v39  ;;  %v2571_v41 = vld [vmem:[%s3209_s7] sm:$0xff] (!%p2082_p13)   ;;  %v2572_v42 = vld [vmem:[%s3209_s7 + $0x8] sm:$0xff] (!%p2082_p13)  }
 0x13a   : > { %859 = vst [vmem:[#allocation2 + $0x18] sm:$0xff] %v843_v51  ;;  %867 = vst [vmem:[#allocation2 + $0x58] sm:$0xff] %v851_v52  ;;  %2330 = vmatprep.subr.bf16.mxu0 (!%p2082_p13), %v2571_v41  ;;  %v2573_v43 = vld [vmem:[%s3209_s7 + $0x10] sm:$0xff] (!%p2082_p13)   ;;  %v2574_v44 = vld [vmem:[%s3209_s7 + $0x18] sm:$0xff] (!%p2082_p13)  }
 0x13b   : > { %857 = vst [vmem:[#allocation2 + $0x8] sm:$0xff] %v841_v55  ;;  %865 = vst [vmem:[#allocation2 + $0x48] sm:$0xff] %v849_v56  ;;  %2331 = vmatpush3.bf16.msra.mxu0 (!%p2082_p13), %v2571_v41  ;;  %v2575_v45 = vld [vmem:[%s3209_s7 + $0x20] sm:$0xff] (!%p2082_p13)   ;;  %v2576_v46 = vld [vmem:[%s3209_s7 + $0x28] sm:$0xff] (!%p2082_p13)  }
 0x13c   : > { %2311 = vmatpush3.bf16.msra.mxu1 (!%p2082_p13), %v2569_v39  ;;  %2332 = vmatprep.subr.bf16.mxu0 (!%p2082_p13), %v2572_v42  ;;  %v2083_v47 = vld [vmem:[%s3206_s4] ss:$0 sm:$0xff] (!%p2082_p13)  ;;  %v2578_v41 = vld [vmem:[%s3209_s7 + $0x38] sm:$0xff] (!%p2082_p13)  }
 0x13d   : > { %v2256_v61 = vpop.f32.mrb[4].mxu0  ;;  %v2264_v62 = vpop.f32.mrb[4].mxu1  ;;  %875 = sbr.rel (%p2082_p13) target bundleno = 1226 (0x4ca), region = 117  ;;  %2312 = vmatprep.subr.bf16.mxu1 (!%p2082_p13), %v2570_v40 }
 0x13e   : > { %v846_v1 = vadd.f32 %v2256_v61, %v605_v57  ;;  %v854_v2 = vadd.f32 %v2264_v62, %v613_v58  ;;  %v793_v3 = vpop.f32.mrb[5].mxu0  ;;  %v825_v4 = vpop.f32.mrb[5].mxu1 }
 0x13f   : > { %v844_v7 = vadd.f32 %v793_v3, %v603_v59  ;;  %v852_v8 = vadd.f32 %v825_v4, %v611_v60  ;;  %v2257_v9 = vpop.f32.mrb[6].mxu0  ;;  %v2265_v10 = vpop.f32.mrb[6].mxu1  ;;  %2333 = vmatpush3.bf16.msra.mxu0 (!%p2082_p13), %v2572_v42  ;;  %v2579_v42 = vld [vmem:[%s3212_s10] sm:$0xff] (!%p2082_p13)  }
 0x140   : > { %862 = vst [vmem:[#allocation2 + $0x30] sm:$0xff] %v846_v1  ;;  %870 = vst [vmem:[#allocation2 + $0x70] sm:$0xff] %v854_v2  ;;  %v847_v11 = vadd.f32 %v2257_v9, %v606_v63  ;;  %v855_v12 = vadd.f32 %v2265_v10, %v614_v0  ;;  %v796_v13 = vpop.f32.mrb[7].mxu0  ;;  %v828_v14 = vpop.f32.mrb[7].mxu1  ;;  %2287 = vmatmul.mubr.bf16.gmra.mrb[4].mxu0 (!%p2082_p13), %v2558_v34  ;;  %2313 = vmatpush3.bf16.msra.mxu1 (!%p2082_p13), %v2570_v40  ;;  %v2577_v40 = vld [vmem:[%s3209_s7 + $0x30] sm:$0xff] (!%p2082_p13)  }
 0x141   : > { %860 = vst [vmem:[#allocation2 + $0x20] sm:$0xff] %v844_v7  ;;  %868 = vst [vmem:[#allocation2 + $0x60] sm:$0xff] %v852_v8  ;;  %v845_v15 = vadd.f32 %v796_v13, %v604_v5  ;;  %v853_v16 = vadd.f32 %v828_v14, %v612_v6  ;;  %2290 = vmatprep.mubr.bf16.mxu0 (!%p2082_p13), %v2559_v35  ;;  %2334 = vmatprep.subr.bf16.mxu0 (!%p2082_p13), %v2573_v43 }
 0x142   : > { %863 = vst [vmem:[#allocation2 + $0x38] sm:$0xff] %v847_v11  ;;  %871 = vst [vmem:[#allocation2 + $0x78] sm:$0xff] %v855_v12  ;;  %2362 = vmatprep.subr.bf16.mxu1 (!%p2082_p13), %v2579_v42 }
 0x143   : > { %861 = vst [vmem:[#allocation2 + $0x28] sm:$0xff] %v845_v15  ;;  %869 = vst [vmem:[#allocation2 + $0x68] sm:$0xff] %v853_v16  ;;  %2335 = vmatpush3.bf16.msra.mxu0 (!%p2082_p13), %v2573_v43  ;;  %v2580_v43 = vld [vmem:[%s3212_s10 + $0x8] sm:$0xff] (!%p2082_p13)  }
 0x144   : > { %2336 = vmatprep.subr.bf16.mxu0 %v2574_v44 }
 0x147   : > { %2337 = vmatpush3.bf16.msra.mxu0 %v2574_v44  ;;  %v3007_v44 = vld [vmem:[%s3211_s9] sm:$0xff]  }
 0x148   : > { %2291 = vmatmul.mubr.bf16.gmra.mrb[8].mxu0 %v2560_v36  ;;  %2338 = vmatprep.subr.bf16.mxu0 %v2575_v45 }
 0x149   : > { %2294 = vmatprep.mubr.bf16.mxu0 %v2561_v37 }
 0x14b   : > { %2339 = vmatpush3.bf16.msra.mxu0 %v2575_v45  ;;  %v1564_v45 = vld [vmem:[#allocation2] sm:$0xff] }
 0x14c   : > { %2340 = vmatprep.subr.bf16.mxu0 %v2576_v46 }
 0x14f   : > { %2341 = vmatpush3.bf16.msra.mxu0 %v2576_v46  ;;  %v2581_v46 = vld [vmem:[%s3212_s10 + $0x10] sm:$0xff]  }
 0x150   : > { %2295 = vmatmul.mubr.bf16.gmra.mrb[12].mxu0 %v2562_v38  ;;  %2342 = vmatprep.subr.bf16.mxu0 %v2577_v40 }
 0x153   : > { %2343 = vmatpush3.bf16.msra.mxu0 %v2577_v40 }
 0x154   : > { %2344 = vmatprep.subr.bf16.mxu0 %v2578_v41 }
 0x157   : > { %2345 = vmatpush3.bf16.msra.mxu0 %v2578_v41 }
 0x158   : > { %2394 = vmatprep.subr.bf16.mxu0 %v3007_v44 }
 0x20b   : > { %v2284_v48 = vpop.f32.mrb[0].mxu0 }
 0x20c   : > { %v1045_v49 = vpop.f32.mrb[1].mxu0  ;;  %v2914_v52 = vadd.f32 %v2284_v48, %v2083_v47 }
 0x20d   : > { %v2912_v50 = vadd.f32 %v2083_v47, %v1045_v49  ;;  %v2285_v51 = vpop.f32.mrb[2].mxu0  ;;  %v2582_v49 = vld [vmem:[%s3212_s10 + $0x18] sm:$0xff]  }
 0x20e   : > { %v2916_v53 = vadd.f32 %v2285_v51, %v2083_v47  ;;  %v1048_v54 = vpop.f32.mrb[3].mxu0  ;;  %v1110_v59 = vmax.f32 %v2914_v52, 0.0  ;;  %v2583_v51 = vld [vmem:[%s3212_s10 + $0x20] sm:$0xff]  }
 0x20f   : > { %v2918_v55 = vadd.f32 %v2083_v47, %v1048_v54  ;;  %v1108_v57 = vmax.f32 %v2912_v50, 0.0  ;;  %v2585_v54 = vld [vmem:[%s3212_s10 + $0x28] sm:$0xff]  }
 0x210   : > { %v1111_v56 = vmax.f32 %v2916_v53, 0.0 }
 0x211   : > { %v1109_v58 = vmax.f32 %v2918_v55, 0.0 }
 0x212   : > { %v1125_v62 = vpack.c.bf16 %v1111_v56, %v1110_v59 }
 0x213   : > { %v2288_v60 = vpop.f32.mrb[4].mxu0  ;;  %v1124_v61 = vpack.c.bf16 %v1109_v58, %v1108_v57 }
 0x214   : > { %v1061_v63 = vpop.f32.mrb[5].mxu0  ;;  %v2934_v2 = vadd.f32 %v2288_v60, %v2083_v47  ;;  %v2587_v60 = vld [vmem:[%s3212_s10 + $0x30] sm:$0xff]  }
 0x215   : > { %v2932_v0 = vadd.f32 %v2083_v47, %v1061_v63  ;;  %v2289_v1 = vpop.f32.mrb[6].mxu0  ;;  %2314 = vmatprep.mubr.bf16.mxu1 %v1124_v61  ;;  %v2589_v61 = vld [vmem:[%s3212_s10 + $0x38] sm:$0xff]  }
 0x216   : > { %v2936_v3 = vadd.f32 %v2289_v1, %v2083_v47  ;;  %v1064_v4 = vpop.f32.mrb[7].mxu0  ;;  %2315 = vmatmul.mubr.bf16.vlgmr.msra.gmra.mrb[0].mxu1 %v1125_v62  ;;  %v1114_v9 = vmax.f32 %v2934_v2, 0.0  ;;  %v1566_v62 = vld [vmem:[#allocation2 + $0x10] sm:$0xff]  ;;  %v1567_v63 = vld [vmem:[#allocation2 + $0x18] sm:$0xff] }
 0x217   : > { %v2938_v5 = vadd.f32 %v2083_v47, %v1064_v4  ;;  %v1112_v7 = vmax.f32 %v2932_v0, 0.0  ;;  %2363 = vmatpush3.bf16.msra.mxu1 %v2579_v42  ;;  %v1581_v1 = vpack.c.bf16 %v1567_v63, %v1566_v62  ;;  %v2586_v4 = vld [vmem:[%s3211_s9 + $0x8] sm:$0xff]  }
 0x218   : > { %v1115_v6 = vmax.f32 %v2936_v3, 0.0  ;;  %2364 = vmatprep.subr.bf16.mxu1 %v2580_v43 }
 0x219   : > { %v1113_v8 = vmax.f32 %v2938_v5, 0.0 }
 0x21a   : > { %v1127_v12 = vpack.c.bf16 %v1115_v6, %v1114_v9 }
 0x21b   : > { %v1126_v10 = vpack.c.bf16 %v1113_v8, %v1112_v7  ;;  %v2292_v11 = vpop.f32.mrb[8].mxu0  ;;  %2365 = vmatpush3.bf16.msra.mxu1 %v2580_v43 }
 0x21c   : > { %v1077_v13 = vpop.f32.mrb[9].mxu0  ;;  %v2954_v16 = vadd.f32 %v2292_v11, %v2083_v47  ;;  %2366 = vmatprep.subr.bf16.mxu1 %v2581_v46  ;;  %v2590_v11 = vld [vmem:[%s3211_s9 + $0x18] sm:$0xff]  }
 0x21d   : > { %v2952_v14 = vadd.f32 %v2083_v47, %v1077_v13  ;;  %v2293_v15 = vpop.f32.mrb[10].mxu0  ;;  %2318 = vmatprep.mubr.bf16.mxu1 %v1126_v10  ;;  %v2588_v10 = vld [vmem:[%s3211_s9 + $0x10] sm:$0xff]   ;;  %v3049_v13 = vld [vmem:[%s3208_s6] ss:$0 sm:$0xff] }
 0x21e   : > { %v2956_v17 = vadd.f32 %v2293_v15, %v2083_v47  ;;  %v1080_v18 = vpop.f32.mrb[11].mxu0  ;;  %2319 = vmatmul.mubr.bf16.gmra.mrb[4].mxu1 %v1127_v12  ;;  %v1118_v23 = vmax.f32 %v2954_v16, 0.0  ;;  %v3042_v12 = vld [vmem:[%s3211_s9 + $0x20] sm:$0xff]  }
 0x21f   : > { %v2958_v19 = vadd.f32 %v2083_v47, %v1080_v18  ;;  %v1116_v21 = vmax.f32 %v2952_v14, 0.0  ;;  %2367 = vmatpush3.bf16.msra.mxu1 %v2581_v46 }
 0x220   : > { %v1119_v20 = vmax.f32 %v2956_v17, 0.0  ;;  %2368 = vmatprep.subr.bf16.mxu1 %v2582_v49 }
 0x221   : > { %v1117_v22 = vmax.f32 %v2958_v19, 0.0 }
 0x222   : > { %v1129_v26 = vpack.c.bf16 %v1119_v20, %v1118_v23 }
 0x223   : > { %v1128_v24 = vpack.c.bf16 %v1117_v22, %v1116_v21  ;;  %v2296_v25 = vpop.f32.mrb[12].mxu0  ;;  %2369 = vmatpush3.bf16.msra.mxu1 %v2582_v49 }
 0x224   : > { %v1093_v27 = vpop.f32.mrb[13].mxu0  ;;  %v2974_v30 = vadd.f32 %v2296_v25, %v2083_v47  ;;  %2370 = vmatprep.subr.bf16.mxu1 %v2583_v51 }
 0x225   : > { %v2972_v28 = vadd.f32 %v2083_v47, %v1093_v27  ;;  %v2297_v29 = vpop.f32.mrb[14].mxu0  ;;  %2322 = vmatprep.mubr.bf16.mxu1 %v1128_v24 }
 0x226   : > { %v2976_v31 = vadd.f32 %v2297_v29, %v2083_v47  ;;  %v1096_v32 = vpop.f32.mrb[15].mxu0  ;;  %2323 = vmatmul.mubr.bf16.gmra.mrb[8].mxu1 %v1129_v26  ;;  %v1122_v37 = vmax.f32 %v2974_v30, 0.0 }
 0x227   : > { %v2978_v33 = vadd.f32 %v2083_v47, %v1096_v32  ;;  %v1120_v35 = vmax.f32 %v2972_v28, 0.0  ;;  %v1565_v47 = vld [vmem:[#allocation2 + $0x8] sm:$0xff]  ;;  %2371 = vmatpush3.bf16.msra.mxu1 %v2583_v51 }
 0x228   : > { %v1123_v34 = vmax.f32 %v2976_v31, 0.0  ;;  %v1580_v48 = vpack.c.bf16 %v1565_v47, %v1564_v45  ;;  %2372 = vmatprep.subr.bf16.mxu1 %v2585_v54  ;;  %v3143_v31 = vld [vmem:[%s3226_s30] ss:$0 sm:$0xff] }
 0x229   : > { %v1121_v36 = vmax.f32 %v2978_v33, 0.0 }
 0x22a   : > { %v1131_v39 = vpack.c.bf16 %v1123_v34, %v1122_v37 }
 0x22b   : > { %v1130_v38 = vpack.c.bf16 %v1121_v36, %v1120_v35  ;;  %2373 = vmatpush3.bf16.msra.mxu1 %v2585_v54 }
 0x22c   : > { %2374 = vmatprep.subr.bf16.mxu1 %v2587_v60 }
 0x22d   : > { %2326 = vmatprep.mubr.bf16.mxu1 %v1130_v38 }
 0x22e   : > { %2327 = vmatmul.mubr.bf16.gmra.mrb[12].mxu1 %v1131_v39 }
 0x22f   : > { %2378 = vmatprep.mubr.bf16.mxu1 %v1580_v48  ;;  %2375 = vmatpush3.bf16.msra.mxu1 %v2587_v60 }
 0x230   : > { %2376 = vmatprep.subr.bf16.mxu1 %v2589_v61 }
 0x233   : > { %2377 = vmatpush3.bf16.msra.mxu1 %v2589_v61 }
 0x234   : > { %2442 = vmatprep.subr.bf16.mxu1 %v3007_v44 }
 0x236   : > { %2379 = vmatmul.mubr.bf16.vlgmr.msra.gmra.mrb[16].mxu1 %v1581_v1 }
 0x237   : > { %2450 = vmatpush3.bf16.msra.mxu1 %v3007_v44 }
 0x238   : > { %2443 = vmatprep.subr.bf16.mxu1 %v2586_v4 }
 0x23b   : > { %2451 = vmatpush3.bf16.msra.mxu1 %v2586_v4 }
 0x23c   : > { %2444 = vmatprep.subr.bf16.mxu1 %v2588_v10 }
 0x23f   : > { %2452 = vmatpush3.bf16.msra.mxu1 %v2588_v10 }
 0x240   : > { %2445 = vmatprep.subr.bf16.mxu1 %v2590_v11 }
 0x243   : > { %2453 = vmatpush3.bf16.msra.mxu1 %v2590_v11 }
 0x244   : > { %2446 = vmatprep.subr.bf16.mxu1 %v3042_v12 }
 0x247   : > { %2454 = vmatpush3.bf16.msra.mxu1 %v3042_v12 }
 0x2e9   : > { %v2316_v15 = vpop.f32.mrb[0].mxu1 }
 0x2ea   : > { %v1246_v18 = vadd.f32 %v2316_v15, %v3049_v13  ;;  %v1237_v24 = vpop.f32.mrb[1].mxu1 }
 0x2eb   : > { %v1238_v25 = vadd.f32 %v3049_v13, %v1237_v24  ;;  %v2317_v26 = vpop.f32.mrb[2].mxu1 }
 0x2ec   : > { %v1249_v27 = vadd.f32 %v2317_v26, %v3049_v13  ;;  %v1240_v29 = vpop.f32.mrb[3].mxu1  ;;  %v1302_v38 = vmax.f32 %v1246_v18, 0.0 }
 0x2ed   : > { %v1241_v32 = vadd.f32 %v3049_v13, %v1240_v29  ;;  %v1300_v40 = vmax.f32 %v1238_v25, 0.0 }
 0x2ee   : > { %v1303_v39 = vmax.f32 %v1249_v27, 0.0 }
 0x2ef   : > { %v1301_v41 = vmax.f32 %v1241_v32, 0.0 }
 0x2f0   : > { %v1317_v42 = vpack.c.bf16 %v1303_v39, %v1302_v38 }
 0x2f1   : > { %v1316_v43 = vpack.c.bf16 %v1301_v41, %v1300_v40  ;;  %v2320_v45 = vpop.f32.mrb[4].mxu1 }
 0x2f2   : > { %v1262_v46 = vadd.f32 %v2320_v45, %v3049_v13  ;;  %v1253_v47 = vpop.f32.mrb[5].mxu1 }
 0x2f3   : > { %v1254_v48 = vadd.f32 %v3049_v13, %v1253_v47  ;;  %v2321_v49 = vpop.f32.mrb[6].mxu1  ;;  %2346 = vmatprep.mubr.bf16.mxu0 %v1316_v43 }
 0x2f4   : > { %v1265_v51 = vadd.f32 %v2321_v49, %v3049_v13  ;;  %v1256_v54 = vpop.f32.mrb[7].mxu1  ;;  %2347 = vmatmul.mubr.bf16.vlgmr.msra.gmra.mrb[16].mxu0 %v1317_v42  ;;  %v1306_v61 = vmax.f32 %v1262_v46, 0.0 }
 0x2f5   : > { %v1257_v60 = vadd.f32 %v3049_v13, %v1256_v54  ;;  %2395 = vmatpush3.bf16.msra.mxu0 %v3007_v44  ;;  %v1304_v63 = vmax.f32 %v1254_v48, 0.0 }
 0x2f6   : > { %v1307_v62 = vmax.f32 %v1265_v51, 0.0  ;;  %2396 = vmatprep.subr.bf16.mxu0 %v2586_v4 }
 0x2f7   : > { %v1305_v1 = vmax.f32 %v1257_v60, 0.0 }
 0x2f8   : > { %v1319_v15 = vpack.c.bf16 %v1307_v62, %v1306_v61 }
 0x2f9   : > { %v1318_v18 = vpack.c.bf16 %v1305_v1, %v1304_v63  ;;  %v2324_v24 = vpop.f32.mrb[8].mxu1  ;;  %2397 = vmatpush3.bf16.msra.mxu0 %v2586_v4 }
 0x2fa   : > { %v1278_v25 = vadd.f32 %v2324_v24, %v3049_v13  ;;  %v1269_v26 = vpop.f32.mrb[9].mxu1  ;;  %2398 = vmatprep.subr.bf16.mxu0 %v2588_v10 }
 0x2fb   : > { %v1270_v27 = vadd.f32 %v3049_v13, %v1269_v26  ;;  %v2325_v29 = vpop.f32.mrb[10].mxu1  ;;  %2350 = vmatprep.mubr.bf16.mxu0 %v1318_v18  ;;  %v1569_v18 = vld [vmem:[#allocation2 + $0x28] sm:$0xff]  ;;  %v1570_v26 = vld [vmem:[#allocation2 + $0x30] sm:$0xff] }
 0x2fc   : > { %v1281_v32 = vadd.f32 %v2325_v29, %v3049_v13  ;;  %v1272_v44 = vpop.f32.mrb[11].mxu1  ;;  %2351 = vmatmul.mubr.bf16.gmra.mrb[20].mxu0 %v1319_v15  ;;  %v1310_v39 = vmax.f32 %v1278_v25, 0.0  ;;  %v1568_v15 = vld [vmem:[#allocation2 + $0x20] sm:$0xff]  ;;  %v2592_v25 = vld [vmem:[%s3211_s9 + $0x28] sm:$0xff]   ;;  %v2594_v29 = vld [vmem:[%s3211_s9 + $0x38] sm:$0xff]  }
 0x2fd   : > { %v1273_v38 = vadd.f32 %v3049_v13, %v1272_v44  ;;  %2399 = vmatpush3.bf16.msra.mxu0 %v2588_v10  ;;  %v1308_v41 = vmax.f32 %v1270_v27, 0.0  ;;  %v1582_v24 = vpack.c.bf16 %v1569_v18, %v1568_v15  ;;  %v1571_v27 = vld [vmem:[#allocation2 + $0x38] sm:$0xff]  ;;  %2447 = vmatprep.subr.bf16.mxu1 %v2592_v25  ;;  %v1573_v44 = vld [vmem:[#allocation2 + $0x48] sm:$0xff] }
 0x2fe   : > { %v1311_v40 = vmax.f32 %v1281_v32, 0.0  ;;  %2400 = vmatprep.subr.bf16.mxu0 %v2590_v11  ;;  %2455 = vmatpush3.bf16.msra.mxu1 %v2592_v25  ;;  %v1572_v32 = vld [vmem:[#allocation2 + $0x40] sm:$0xff] }
 0x2ff   : > { %v1309_v4 = vmax.f32 %v1273_v38, 0.0  ;;  %2382 = vmatprep.mubr.bf16.mxu1 %v1582_v24  ;;  %v1584_v38 = vpack.c.bf16 %v1573_v44, %v1572_v32 }
 0x300   : > { %v1321_v42 = vpack.c.bf16 %v1311_v40, %v1310_v39  ;;  %v1574_v39 = vld [vmem:[#allocation2 + $0x50] sm:$0xff]  ;;  %v1575_v40 = vld [vmem:[#allocation2 + $0x58] sm:$0xff] }
 0x301   : > { %v1320_v43 = vpack.c.bf16 %v1309_v4, %v1308_v41  ;;  %v2328_v45 = vpop.f32.mrb[12].mxu1  ;;  %2401 = vmatpush3.bf16.msra.mxu0 %v2590_v11  ;;  %v1585_v41 = vpack.c.bf16 %v1575_v40, %v1574_v39  ;;  %v1576_v4 = vld [vmem:[#allocation2 + $0x60] sm:$0xff] }
 0x302   : > { %v1294_v46 = vadd.f32 %v2328_v45, %v3049_v13  ;;  %v1285_v47 = vpop.f32.mrb[13].mxu1  ;;  %2402 = vmatprep.subr.bf16.mxu0 %v3042_v12  ;;  %v1578_v45 = vld [vmem:[#allocation2 + $0x70] sm:$0xff] }
 0x303   : > { %v1286_v48 = vadd.f32 %v3049_v13, %v1285_v47  ;;  %v2329_v49 = vpop.f32.mrb[14].mxu1  ;;  %2354 = vmatprep.mubr.bf16.mxu0 %v1320_v43 }
 0x304   : > { %v1297_v10 = vadd.f32 %v2329_v49, %v3049_v13  ;;  %v1288_v51 = vpop.f32.mrb[15].mxu1  ;;  %2355 = vmatmul.mubr.bf16.gmra.mrb[24].mxu0 %v1321_v42  ;;  %v1314_v60 = vmax.f32 %v1294_v46, 0.0  ;;  %v1577_v42 = vld [vmem:[#allocation2 + $0x68] sm:$0xff]  ;;  %v1579_v46 = vld [vmem:[#allocation2 + $0x78] sm:$0xff] }
 0x305   : > { %v1289_v54 = vadd.f32 %v3049_v13, %v1288_v51  ;;  %2403 = vmatpush3.bf16.msra.mxu0 %v3042_v12  ;;  %v1312_v11 = vmax.f32 %v1286_v48, 0.0  ;;  %v1583_v13 = vpack.c.bf16 %v1571_v27, %v1570_v26  ;;  %v2593_v12 = vld [vmem:[%s3211_s9 + $0x30] sm:$0xff]   ;;  %v1586_v43 = vpack.c.bf16 %v1577_v42, %v1576_v4 }
 0x306   : > { %v1315_v61 = vmax.f32 %v1297_v10, 0.0  ;;  %2404 = vmatprep.subr.bf16.mxu0 %v2592_v25  ;;  %2448 = vmatprep.subr.bf16.mxu1 %v2593_v12  ;;  %v1587_v47 = vpack.c.bf16 %v1579_v46, %v1578_v45 }
 0x307   : > { %v1313_v62 = vmax.f32 %v1289_v54, 0.0  ;;  %2383 = vmatmul.mubr.bf16.gmra.mrb[20].mxu1 %v1583_v13  ;;  %v3090_v54 = vld [vmem:[%s3225_s23] ss:$0 sm:$0xff] }
 0x308   : > { %v1323_v63 = vpack.c.bf16 %v1315_v61, %v1314_v60  ;;  %2456 = vmatpush3.bf16.msra.mxu1 %v2593_v12  ;;  %2386 = vmatprep.mubr.bf16.mxu1 %v1584_v38 }
 0x309   : > { %v1322_v1 = vpack.c.bf16 %v1313_v62, %v1312_v11  ;;  %2405 = vmatpush3.bf16.msra.mxu0 %v2592_v25  ;;  %2449 = vmatprep.subr.bf16.mxu1 %v2594_v29  ;;  %v3079_v48 = vpop.f32.mrb[16].mxu1 }
 0x30a   : > { %2406 = vmatprep.subr.bf16.mxu0 %v2593_v12  ;;  %v3081_v49 = vpop.f32.mrb[17].mxu1 }
 0x30b   : > { %2358 = vmatprep.mubr.bf16.mxu0 %v1322_v1  ;;  %v3083_v10 = vpop.f32.mrb[18].mxu1 }
 0x30c   : > { %2359 = vmatmul.mubr.bf16.gmra.mrb[28].mxu0 %v1323_v63  ;;  %2457 = vmatpush3.bf16.msra.mxu1 %v2594_v29  ;;  %v3085_v51 = vpop.f32.mrb[19].mxu1 }
 0x30d   : > { %2407 = vmatpush3.bf16.msra.mxu0 %v2593_v12 }
 0x30e   : > { %2408 = vmatprep.subr.bf16.mxu0 %v2594_v29 }
 0x30f   : > { %2387 = vmatmul.mubr.bf16.gmra.mrb[24].mxu1 %v1585_v41 }
 0x310   : > { %2390 = vmatprep.mubr.bf16.mxu1 %v1586_v43 }
 0x311   : > { %2409 = vmatpush3.bf16.msra.mxu0 %v2594_v29 }
 0x317   : > { %2391 = vmatmul.mubr.bf16.gmra.mrb[28].mxu1 %v1587_v47 }
 0x3c7   : > { %v2348_v60 = vpop.f32.mrb[16].mxu0 }
 0x3c8   : > { %v1438_v61 = vadd.f32 %v2348_v60, %v3090_v54  ;;  %v1429_v11 = vpop.f32.mrb[17].mxu0 }
 0x3c9   : > { %v1430_v62 = vadd.f32 %v3090_v54, %v1429_v11  ;;  %v2349_v63 = vpop.f32.mrb[18].mxu0 }
 0x3ca   : > { %v1494_v1 = vmax.f32 %v1438_v61, 0.0  ;;  %v1441_v15 = vadd.f32 %v2349_v63, %v3090_v54  ;;  %v1432_v18 = vpop.f32.mrb[19].mxu0 }
 0x3cb   : > { %v1492_v24 = vmax.f32 %v1430_v62, 0.0  ;;  %v1433_v25 = vadd.f32 %v3090_v54, %v1432_v18 }
 0x3cc   : > { %v1510_v26 = vadd.f32 %v1494_v1, %v1110_v59  ;;  %v1495_v27 = vmax.f32 %v1441_v15, 0.0 }
 0x3cd   : > { %v1508_v13 = vadd.f32 %v1492_v24, %v1108_v57  ;;  %v1493_v12 = vmax.f32 %v1433_v25, 0.0 }
 0x3ce   : > { %v1511_v29 = vadd.f32 %v1495_v27, %v1111_v56  ;;  %v1526_v38 = vmax.f32 %v1510_v26, 0.0 }
 0x3cf   : > { %v1509_v32 = vadd.f32 %v1493_v12, %v1109_v58  ;;  %v2352_v44 = vpop.f32.mrb[20].mxu0  ;;  %v1524_v4 = vmax.f32 %v1508_v13, 0.0 }
 0x3d0   : > { %v1527_v39 = vmax.f32 %v1511_v29, 0.0  ;;  %v1454_v40 = vadd.f32 %v2352_v44, %v3090_v54  ;;  %v1445_v41 = vpop.f32.mrb[21].mxu0 }
 0x3d1   : > { %v1525_v52 = vmax.f32 %v1509_v32, 0.0  ;;  %v1446_v59 = vadd.f32 %v3090_v54, %v1445_v41  ;;  %v2353_v42 = vpop.f32.mrb[22].mxu0 }
 0x3d2   : > { %v1541_v50 = vpack.c.bf16 %v1527_v39, %v1526_v38  ;;  %v1498_v57 = vmax.f32 %v1454_v40, 0.0  ;;  %v1457_v43 = vadd.f32 %v2353_v42, %v3090_v54  ;;  %v1448_v53 = vpop.f32.mrb[23].mxu0 }
 0x3d3   : > { %v1496_v56 = vmax.f32 %v1446_v59, 0.0  ;;  %v1449_v55 = vadd.f32 %v3090_v54, %v1448_v53  ;;  %v1540_v58 = vpack.c.bf16 %v1525_v52, %v1524_v4 }
 0x3d4   : > { %v1514_v45 = vadd.f32 %v1498_v57, %v1114_v9  ;;  %v1499_v46 = vmax.f32 %v1457_v43, 0.0 }
 0x3d5   : > { %v1512_v47 = vadd.f32 %v1496_v56, %v1112_v7  ;;  %v1497_v60 = vmax.f32 %v1449_v55, 0.0  ;;  %2410 = vmatprep.mubr.bf16.mxu0 %v1540_v58 }
 0x3d6   : > { %v1515_v61 = vadd.f32 %v1499_v46, %v1115_v6  ;;  %2411 = vmatmul.mubr.bf16.vlgmr.msra.gmra.mrb[32].mxu0 %v1541_v50  ;;  %v1530_v63 = vmax.f32 %v1514_v45, 0.0 }
 0x3d7   : > { %v1513_v11 = vadd.f32 %v1497_v60, %v1113_v8  ;;  %v2356_v62 = vpop.f32.mrb[24].mxu0  ;;  %v1528_v9 = vmax.f32 %v1512_v47, 0.0 }
 0x3d8   : > { %v1531_v1 = vmax.f32 %v1515_v61, 0.0  ;;  %v1470_v15 = vadd.f32 %v2356_v62, %v3090_v54  ;;  %v1461_v2 = vpop.f32.mrb[25].mxu0 }
 0x3d9   : > { %v1529_v18 = vmax.f32 %v1513_v11, 0.0  ;;  %v1462_v0 = vadd.f32 %v3090_v54, %v1461_v2  ;;  %v2357_v7 = vpop.f32.mrb[26].mxu0 }
 0x3da   : > { %v1502_v24 = vmax.f32 %v1470_v15, 0.0  ;;  %v1473_v25 = vadd.f32 %v2357_v7, %v3090_v54  ;;  %v1464_v3 = vpop.f32.mrb[27].mxu0  ;;  %v1543_v6 = vpack.c.bf16 %v1531_v1, %v1530_v63 }
 0x3db   : > { %v1500_v26 = vmax.f32 %v1462_v0, 0.0  ;;  %v1465_v5 = vadd.f32 %v3090_v54, %v1464_v3  ;;  %v1542_v8 = vpack.c.bf16 %v1529_v18, %v1528_v9 }
 0x3dc   : > { %v1518_v27 = vadd.f32 %v1502_v24, %v1118_v23  ;;  %v1503_v13 = vmax.f32 %v1473_v25, 0.0 }
 0x3dd   : > { %v1516_v12 = vadd.f32 %v1500_v26, %v1116_v21  ;;  %v1501_v29 = vmax.f32 %v1465_v5, 0.0  ;;  %2414 = vmatprep.mubr.bf16.mxu0 %v1542_v8 }
 0x3de   : > { %v1519_v32 = vadd.f32 %v1503_v13, %v1119_v20  ;;  %2415 = vmatmul.mubr.bf16.gmra.mrb[36].mxu0 %v1543_v6  ;;  %v1534_v39 = vmax.f32 %v1518_v27, 0.0 }
 0x3df   : > { %v1517_v44 = vadd.f32 %v1501_v29, %v1117_v22  ;;  %v2360_v38 = vpop.f32.mrb[28].mxu0  ;;  %v1532_v23 = vmax.f32 %v1516_v12, 0.0 }
 0x3e0   : > { %v1535_v40 = vmax.f32 %v1519_v32, 0.0  ;;  %v1486_v41 = vadd.f32 %v2360_v38, %v3090_v54  ;;  %v1477_v16 = vpop.f32.mrb[29].mxu0 }
 0x3e1   : > { %v1533_v4 = vmax.f32 %v1517_v44, 0.0  ;;  %v1478_v14 = vadd.f32 %v3090_v54, %v1477_v16  ;;  %v2361_v21 = vpop.f32.mrb[30].mxu0 }
 0x3e2   : > { %v1545_v52 = vpack.c.bf16 %v1535_v40, %v1534_v39  ;;  %v1506_v59 = vmax.f32 %v1486_v41, 0.0  ;;  %v1489_v17 = vadd.f32 %v2361_v21, %v3090_v54  ;;  %v1480_v20 = vpop.f32.mrb[31].mxu0 }
 0x3e3   : > { %v1504_v42 = vmax.f32 %v1478_v14, 0.0  ;;  %v1481_v19 = vadd.f32 %v3090_v54, %v1480_v20  ;;  %v1544_v22 = vpack.c.bf16 %v1533_v4, %v1532_v23 }
 0x3e4   : > { %v1522_v50 = vadd.f32 %v1506_v59, %v1122_v37  ;;  %v1507_v57 = vmax.f32 %v1489_v17, 0.0  ;;  %v2384_v37 = vpop.f32.mrb[20].mxu1 }
 0x3e5   : > { %v1520_v43 = vadd.f32 %v1504_v42, %v1120_v35  ;;  %v1505_v53 = vmax.f32 %v1481_v19, 0.0  ;;  %2418 = vmatprep.mubr.bf16.mxu1 %v1544_v22  ;;  %v1702_v28 = vpop.f32.mrb[21].mxu1 }
 0x3e6   : > { %v1523_v56 = vadd.f32 %v1507_v57, %v1123_v34  ;;  %2419 = vmatmul.mubr.bf16.vlgmr.msra.gmra.mrb[24].mxu1 %v1545_v52  ;;  %v1538_v58 = vmax.f32 %v1522_v50, 0.0  ;;  %v2385_v35 = vpop.f32.mrb[22].mxu1 }
 0x3e7   : > { %v1521_v55 = vadd.f32 %v1505_v53, %v1121_v36  ;;  %v1536_v54 = vmax.f32 %v1520_v43, 0.0  ;;  %v1705_v60 = vpop.f32.mrb[23].mxu1 }
 0x3e8   : > { %v1539_v45 = vmax.f32 %v1523_v56, 0.0 }
 0x3e9   : > { %v1537_v46 = vmax.f32 %v1521_v55, 0.0 }
 0x3ea   : > { %v1547_v47 = vpack.c.bf16 %v1539_v45, %v1538_v58 }
 0x3eb   : > { %v1546_v30 = vpack.c.bf16 %v1537_v46, %v1536_v54 }
 0x3ed   : > { %2422 = vmatprep.mubr.bf16.mxu1 %v1546_v30 }
 0x3ee   : > { %2423 = vmatmul.mubr.bf16.gmra.mrb[28].mxu1 %v1547_v47 }
 0x4a9   : > { %v2412_v61 = vpop.f32.mrb[32].mxu0 }
 0x4aa   : > { %v1840_v33 = vadd.f32 %v2412_v61, %v3079_v48  ;;  %v1831_v34 = vpop.f32.mrb[33].mxu0 }
 0x4ab   : > { %v1832_v36 = vadd.f32 %v1831_v34, %v3081_v49  ;;  %v2413_v11 = vpop.f32.mrb[34].mxu0 }
 0x4ac   : > { %v1903_v62 = vadd.f32 %v3143_v31, %v1840_v33  ;;  %v1843_v63 = vadd.f32 %v2413_v11, %v3083_v10  ;;  %v1834_v1 = vpop.f32.mrb[35].mxu0 }
 0x4ad   : > { %v1901_v15 = vadd.f32 %v3143_v31, %v1832_v36  ;;  %v1835_v2 = vadd.f32 %v1834_v1, %v3085_v51 }
 0x4ae   : > { %v1919_v9 = vmax.f32 %v1903_v62, 0.0  ;;  %v1904_v18 = vadd.f32 %v3143_v31, %v1843_v63 }
 0x4af   : > { %v1917_v0 = vmax.f32 %v1901_v15, 0.0  ;;  %v1902_v48 = vadd.f32 %v3143_v31, %v1835_v2 }
 0x4b0   : > { %1935 = vst [vmem:[%s2808_s1 + $0x10] sm:$0xff] %v1919_v9  ;;  %v1920_v49 = vmax.f32 %v1904_v18, 0.0 }
 0x4b1   : > { %1933 = vst [vmem:[%s2808_s1] sm:$0xff] %v1917_v0  ;;  %v1918_v7 = vmax.f32 %v1902_v48, 0.0  ;;  %v2416_v24 = vpop.f32.mrb[36].mxu0 }
 0x4b2   : > { %1936 = vst [vmem:[%s2808_s1 + $0x18] sm:$0xff] %v1920_v49  ;;  %v1856_v10 = vadd.f32 %v2416_v24, %v2384_v37  ;;  %v1847_v25 = vpop.f32.mrb[37].mxu0 }
 0x4b3   : > { %1934 = vst [vmem:[%s2808_s1 + $0x8] sm:$0xff] %v1918_v7  ;;  %v1848_v3 = vadd.f32 %v1847_v25, %v1702_v28  ;;  %v2417_v51 = vpop.f32.mrb[38].mxu0 }
 0x4b4   : > { %v1907_v6 = vadd.f32 %v3143_v31, %v1856_v10  ;;  %v1859_v26 = vadd.f32 %v2417_v51, %v2385_v35  ;;  %v1850_v5 = vpop.f32.mrb[39].mxu0 }
 0x4b5   : > { %v1905_v8 = vadd.f32 %v3143_v31, %v1848_v3  ;;  %v1851_v27 = vadd.f32 %v1850_v5, %v1705_v60 }
 0x4b6   : > { %v1923_v13 = vmax.f32 %v1907_v6, 0.0  ;;  %v1908_v12 = vadd.f32 %v3143_v31, %v1859_v26 }
 0x4b7   : > { %v1921_v29 = vmax.f32 %v1905_v8, 0.0  ;;  %v1906_v32 = vadd.f32 %v3143_v31, %v1851_v27 }
 0x4b8   : > { %1939 = vst [vmem:[%s2808_s1 + $0x30] sm:$0xff] %v1923_v13  ;;  %v1924_v44 = vmax.f32 %v1908_v12, 0.0 }
 0x4b9   : > { %1937 = vst [vmem:[%s2808_s1 + $0x20] sm:$0xff] %v1921_v29  ;;  %v1922_v38 = vmax.f32 %v1906_v32, 0.0  ;;  %v2420_v39 = vpop.f32.mrb[24].mxu1 }
 0x4ba   : > { %1940 = vst [vmem:[%s2808_s1 + $0x38] sm:$0xff] %v1924_v44  ;;  %v1911_v40 = vadd.f32 %v2420_v39, %v3143_v31  ;;  %v1863_v41 = vpop.f32.mrb[25].mxu1 }
 0x4bb   : > { %1938 = vst [vmem:[%s2808_s1 + $0x28] sm:$0xff] %v1922_v38  ;;  %v1909_v16 = vadd.f32 %v3143_v31, %v1863_v41  ;;  %v2421_v23 = vpop.f32.mrb[26].mxu1 }
 0x4bc   : > { %v1927_v4 = vmax.f32 %v1911_v40, 0.0  ;;  %v1912_v14 = vadd.f32 %v2421_v23, %v3143_v31  ;;  %v1866_v21 = vpop.f32.mrb[27].mxu1 }
 0x4bd   : > { %v1925_v52 = vmax.f32 %v1909_v16, 0.0  ;;  %v1910_v59 = vadd.f32 %v3143_v31, %v1866_v21 }
 0x4be   : > { %1943 = vst [vmem:[%s2808_s1 + $0x50] sm:$0xff] %v1927_v4  ;;  %v1928_v17 = vmax.f32 %v1912_v14, 0.0 }
 0x4bf   : > { %1941 = vst [vmem:[%s2808_s1 + $0x40] sm:$0xff] %v1925_v52  ;;  %v1926_v20 = vmax.f32 %v1910_v59, 0.0 }
 0x4c0   : > { %1944 = vst [vmem:[%s2808_s1 + $0x58] sm:$0xff] %v1928_v17 }
 0x4c1   : > { %1942 = vst [vmem:[%s2808_s1 + $0x48] sm:$0xff] %v1926_v20  ;;  %v2424_v42 = vpop.f32.mrb[28].mxu1 }
 0x4c2   : > { %v1915_v19 = vadd.f32 %v2424_v42, %v3143_v31  ;;  %v1879_v22 = vpop.f32.mrb[29].mxu1 }
 0x4c3   : > { %v1913_v50 = vadd.f32 %v3143_v31, %v1879_v22  ;;  %v2425_v57 = vpop.f32.mrb[30].mxu1 }
 0x4c4   : > { %v1931_v43 = vmax.f32 %v1915_v19, 0.0  ;;  %v1916_v53 = vadd.f32 %v2425_v57, %v3143_v31  ;;  %v1882_v56 = vpop.f32.mrb[31].mxu1 }
 0x4c5   : > { %v1929_v55 = vmax.f32 %v1913_v50, 0.0  ;;  %v1914_v58 = vadd.f32 %v3143_v31, %v1882_v56 }
 0x4c6   : > { %1947 = vst [vmem:[%s2808_s1 + $0x70] sm:$0xff] %v1931_v43  ;;  %v1932_v45 = vmax.f32 %v1916_v53, 0.0 }
 0x4c7   : > { %1945 = vst [vmem:[%s2808_s1 + $0x60] sm:$0xff] %v1929_v55  ;;  %v1930_v54 = vmax.f32 %v1914_v58, 0.0 }
 0x4c8   : > { %1948 = vst [vmem:[%s2808_s1 + $0x78] sm:$0xff] %v1932_v45 }
 0x4c9   : > { %1946 = vst [vmem:[%s2808_s1 + $0x68] sm:$0xff] %v1930_v54 }
 0x4ca PF: > { %s22_s27 = sadd.s32 1, %s2649_s27   ;;  %s3227_s24 = sld [smem:[#allocation4_spill]] }
 0x4cb   : > { %p19_p0 = scmp.ge.s32.totalorder %s22_s27, 6   ;;  %s3228_s13 = sld [smem:[#allocation5_spill]] }
 0x4cc   : > { %s3229_s26 = sld [smem:[#allocation6_spill]]  ;;  %s3230_s21 = smov %s2629_s22 }
 0x4cd   : > { %s3231_s22 = smov %s2768_s16  ;;  %s3232_s23 = smov %s2641_s25 }
 0x4ce   :  { %21 = sbr.rel (!%p19_p0) target bundleno = 8 (0x8), region = 158 }
 0x4d1   : > { %s3233_s25 = smov %s3228_s13 }

</bundles_post_ra>
